<compile_context>
chip_gen: v5e
topology: v5e:2x2
jax: 0.10.0
libtpu: 0.0.40
codegen_flags: <defaults>
</compile_context>

<pallas_src>
import math
import functools

import jax
import jax.numpy as jnp
from jax import lax
from jax.experimental import pallas as pl
from jax.experimental.pallas import tpu as pltpu


def _quantize_ema_kernel(x_ref, e_ref, e2_ref, q_ref, ind_ref, osum_ref,
                         esum_ref, diffp_ref, *, n_embed, rows_per_tile,
                         tiles_per_par, valid_rows, dist_dtype):
    """One (parallel-slice p, tile i) step; accumulators are per-slice resident."""
    p = pl.program_id(0)
    i = pl.program_id(1)

    @pl.when(i == 0)
    def _():
        osum_ref[...] = jnp.zeros_like(osum_ref)
        esum_ref[...] = jnp.zeros_like(esum_ref)
        diffp_ref[...] = jnp.zeros_like(diffp_ref)

    x = x_ref[...].astype(jnp.float32)                        # (TM, C)
    e = e_ref[...]                                            # (C,  K) f32
    e2 = e2_ref[...]                                          # (1,  K) f32 (hoisted)

    # argmin_k |x - e_k|^2  ==  argmin_k (|e_k|^2 - 2 x.e_k)   (row term dropped)
    xe = jnp.dot(x.astype(dist_dtype), e.astype(dist_dtype),
                 preferred_element_type=jnp.float32)          # (TM, K)  MXU
    dist = e2 - 2.0 * xe                                      # (TM, K)

    tm = x.shape[0]
    iota = lax.broadcasted_iota(jnp.int32, (tm, n_embed), 1)  # (TM, K)
    dmin = jnp.min(dist, axis=-1, keepdims=True)              # (TM, 1)
    # first index attaining the minimum (== torch (-dist).max(1) index)
    ind = jnp.min(jnp.where(dist <= dmin, iota, n_embed),
                  axis=-1, keepdims=True)                     # (TM, 1) int32
    ind_ref[...] = ind

    onehot = (iota == ind).astype(jnp.float32)                # (TM, K)

    # Mask out padded rows (only traced in when padding exists).  Zeroed onehot
    # rows drop out of osum/esum and give q = 0 for the (cropped) padded rows.
    if valid_rows is not None:
        tile_idx = p * tiles_per_par + i
        row0 = tile_idx * rows_per_tile
        rows = row0 + lax.broadcasted_iota(jnp.int32, (tm, 1), 0)
        onehot = onehot * (rows < valid_rows).astype(jnp.float32)

    # quantize = one_hot @ E^T  (codebook gather on the MXU)
    q = lax.dot_general(onehot, e, (((1,), (1,)), ((), ())),
                        preferred_element_type=jnp.float32)   # (TM, C)
    q_ref[...] = q.astype(q_ref.dtype)

    # squared quantization error, kept as per-lane (channel) partials
    d = q - x                                                 # padded rows: 0 - 0
    diffp_ref[...] += jnp.sum(d * d, axis=0, keepdims=True)[None]        # (1,1,C)

    # EMA statistics (training path of the PyTorch module)
    osum_ref[...] += jnp.sum(onehot, axis=0, keepdims=True)[None]        # (1,1,K)
    esum_ref[...] += lax.dot_general(x, onehot, (((0,), (0,)), ((), ())),
                                     preferred_element_type=jnp.float32)[None]  # (1,C,K)


def _choose_tiling(m, c, k, tm_req, n_par_req, vmem_limit_bytes):
    """Pick (n_par, rows_per_tile, tiles_per_par, m_pad) for the 2-D grid."""
    n_par = n_par_req if (n_par_req > 1 and m >= 16 * n_par_req) else 1
    per = (m + n_par - 1) // n_par                 # rows per parallel slice
    tm = min(tm_req, ((per + 7) // 8) * 8)         # never wider than one slice
    tm = max(8, (tm // 8) * 8)                     # sublane-aligned
    # Keep the (tm, K) f32 temporaries (dist / onehot / iota), the double
    # buffered token tiles and the resident codebook + esum accumulator inside
    # the VMEM budget (re-derived for v7x's 64 MiB physical VMEM).
    budget = int(0.6 * vmem_limit_bytes)
    while tm > 8 and 4 * (3 * tm * k + 4 * tm * c + 3 * c * k + 2 * k) > budget:
        tm = max(8, (tm // 2 // 8) * 8)
    tiles_per_par = (per + tm - 1) // tm
    m_pad = n_par * tiles_per_par * tm
    return n_par, tm, tiles_per_par, m_pad


def quantize_ema_forward(x_nchw, embeddings, ema_cluster_size_hidden,
                         ema_dw_hidden, counter, *, decay=0.99, eps=1e-5,
                         training=True, tm=512, n_par=2,
                         dist_dtype=jnp.float32,
                         vmem_limit_bytes=64 * 1024 * 1024):
    """Functional equivalent of QuantizeEMA.forward.

    Returns (quantize [N,C,H,W], diff scalar, embed_ind [N,H,W], new_state)
    where new_state = (embeddings, ema_cluster_size_hidden, ema_dw_hidden, counter).
    """
    n, c, h, w = x_nchw.shape
    k = embeddings.shape[1]
    m = n * h * w

    # TODO(synk): these two permutes cost an extra HBM round trip each; a
    # channels-last model layout would remove them entirely.
    flat = jnp.transpose(x_nchw, (0, 2, 3, 1)).reshape(m, c)

    n_par, tm_eff, tiles_per_par, m_pad = _choose_tiling(
        m, c, k, tm, n_par, vmem_limit_bytes)
    if m_pad != m:
        flat = jnp.pad(flat, ((0, m_pad - m), (0, 0)))
        valid_rows = m
    else:
        valid_rows = None

    e_f32 = embeddings.astype(jnp.float32)
    # |e_k|^2 hoisted out of the kernel (was recomputed on every tile before).
    e2 = jnp.sum(e_f32 * e_f32, axis=0, keepdims=True)          # (1, K)

    kern = functools.partial(
        _quantize_ema_kernel, n_embed=k, rows_per_tile=tm_eff,
        tiles_per_par=tiles_per_par, valid_rows=valid_rows, dist_dtype=dist_dtype)

    grid = (n_par, tiles_per_par)

    q_flat, ind_flat, osum_p, esum_p, diff_p = pl.pallas_call(
        kern,
        out_shape=(
            jax.ShapeDtypeStruct((m_pad, c), x_nchw.dtype),   # quantize (flat)
            jax.ShapeDtypeStruct((m_pad, 1), jnp.int32),      # embed_ind (flat)
            jax.ShapeDtypeStruct((n_par, 1, k), jnp.float32), # embed_onehot_sum (per slice)
            jax.ShapeDtypeStruct((n_par, c, k), jnp.float32), # embed_sum (per slice)
            jax.ShapeDtypeStruct((n_par, 1, c), jnp.float32), # diff per-lane partials
        ),
        grid_spec=pltpu.PrefetchScalarGridSpec(
            num_scalar_prefetch=0,
            grid=grid,
            in_specs=[
                pl.BlockSpec((tm_eff, c), lambda p, i: (p * tiles_per_par + i, 0)),
                # NOTE(synk): the codebook / e2 are grid-resident; single
                # buffering them (pipeline_mode) would halve their VMEM cost.
                pl.BlockSpec((c, k), lambda p, i: (0, 0)),
                pl.BlockSpec((1, k), lambda p, i: (0, 0)),
            ],
            out_specs=[
                pl.BlockSpec((tm_eff, c), lambda p, i: (p * tiles_per_par + i, 0)),
                pl.BlockSpec((tm_eff, 1), lambda p, i: (p * tiles_per_par + i, 0)),
                pl.BlockSpec((1, 1, k), lambda p, i: (p, 0, 0)),
                pl.BlockSpec((1, c, k), lambda p, i: (p, 0, 0)),
                pl.BlockSpec((1, 1, c), lambda p, i: (p, 0, 0)),
            ],
        ),
        compiler_params=pltpu.CompilerParams(
            dimension_semantics=("parallel", "arbitrary"),
            vmem_limit_bytes=vmem_limit_bytes),
    )(flat, e_f32, e2)

    # combine the per-parallel-slice partials
    onehot_sum = jnp.sum(osum_p, axis=0)[0]                     # (K,)
    embed_sum = jnp.sum(esum_p, axis=0)                         # (C, K)
    diff = jnp.sum(diff_p) / float(m * c)

    quantize = q_flat[:m].reshape(n, h, w, c).transpose(0, 3, 1, 2)
    embed_ind = ind_flat[:m].reshape(n, h, w)

    new_embeddings = embeddings
    if training:
        # EMA buffer updates (functional version of the in-place PyTorch buffer
        # mutation).  dist_world_size == 1 -> no all_reduce.
        counter = counter + 1
        ema_cluster_size_hidden = ema_cluster_size_hidden + (1.0 - decay) * (
            onehot_sum - ema_cluster_size_hidden)
        ema_dw_hidden = ema_dw_hidden + (1.0 - decay) * (embed_sum - ema_dw_hidden)
        corr = 1.0 - decay ** counter.astype(jnp.float32)
        ema_cluster_size = ema_cluster_size_hidden / corr
        ema_dw = ema_dw_hidden / corr
        ntot = jnp.sum(ema_cluster_size)
        cluster_size = (ema_cluster_size + eps) / (ntot + k * eps) * ntot
        new_embeddings = ema_dw / cluster_size[None, :]

    # straight-through estimator: forward value of `input + (q - input).detach()`
    # is numerically `quantize` (gradient routing is a backward-only concept).
    new_state = (new_embeddings, ema_cluster_size_hidden, ema_dw_hidden, counter)
    return quantize, diff, embed_ind, new_state


if __name__ == "__main__":
    dim, n_embed = 16, 128
    N, H, W = 2, 16, 16
    decay, eps = 0.99, 1e-5

    key = jax.random.PRNGKey(0)
    kx, ke = jax.random.split(key)

    x = jax.random.normal(kx, (N, dim, H, W), dtype=jnp.float32)
    embeddings = jax.random.uniform(
        ke, (dim, n_embed), dtype=jnp.float32,
        minval=-math.sqrt(3.0), maxval=math.sqrt(3.0))
    ema_cluster_size_hidden = jnp.zeros((n_embed,), jnp.float32)
    ema_dw_hidden = jnp.zeros((dim, n_embed), jnp.float32)
    counter = jnp.array(0, dtype=jnp.int32)

    quantize, diff, embed_ind, new_state = quantize_ema_forward(
        x, embeddings, ema_cluster_size_hidden, ema_dw_hidden, counter,
        decay=decay, eps=eps, training=True)
    jax.block_until_ready((quantize, diff, embed_ind, new_state))

    # ---- correctness checks (robust to MXU rounding / argmin near-ties) ------
    flat = jnp.transpose(x, (0, 2, 3, 1)).reshape(-1, dim)
    m = flat.shape[0]
    ind = embed_ind.reshape(-1)

    # 1) quantize must be exactly the gather of the chosen codes
    q_gather = embeddings.T[ind].reshape(N, H, W, dim).transpose(0, 3, 1, 2)
    assert jnp.allclose(quantize, q_gather, atol=1e-5, rtol=1e-5)

    # 2) chosen codes are (near-)nearest neighbours under exact f32 distances
    dist_exact = jnp.sum((flat[:, None, :] - embeddings.T[None, :, :]) ** 2, -1)
    chosen = dist_exact[jnp.arange(m), ind]
    assert bool(jnp.all(chosen <= dist_exact.min(axis=1) + 1e-2))

    # 3) diff is the mean squared quantization error
    assert jnp.allclose(diff, jnp.mean((q_gather - x) ** 2), atol=1e-5, rtol=1e-5)

    # 4) EMA statistics / codebook update match a pure-JAX recomputation
    onehot = jax.nn.one_hot(ind, n_embed, dtype=jnp.float32)
    oh_sum = onehot.sum(0)
    e_sum = jnp.matmul(flat.T, onehot, precision=jax.lax.Precision.HIGHEST)
    csh = ema_cluster_size_hidden + (1.0 - decay) * (oh_sum - ema_cluster_size_hidden)
    dwh = ema_dw_hidden + (1.0 - decay) * (e_sum - ema_dw_hidden)
    corr = 1.0 - decay ** 1.0
    cs = csh / corr
    dw = dwh / corr
    ntot = cs.sum()
    cs_n = (cs + eps) / (ntot + n_embed * eps) * ntot
    emb_ref = dw / cs_n[None, :]
    new_emb, new_csh, new_dwh, new_counter = new_state
    assert jnp.allclose(new_csh, csh, atol=1e-4, rtol=1e-4)
    assert jnp.allclose(new_dwh, dwh, atol=1e-4, rtol=1e-4)
    assert jnp.allclose(new_emb, emb_ref, atol=1e-4, rtol=1e-4)
    assert int(new_counter) == 1

    print("KERNEL_OK")
</pallas_src>

<mosaic_0001>
module attributes {stable_mosaic.version = 11 : i64} {
  func.func @_quantize_ema_kernel(%arg0: i32, %arg1: i32, %arg2: memref<256x16xf32, #tpu.memory_space<vmem>>, %arg3: memref<16x128xf32, #tpu.memory_space<vmem>>, %arg4: memref<1x128xf32, #tpu.memory_space<vmem>>, %arg5: memref<256x16xf32, #tpu.memory_space<vmem>>, %arg6: memref<256x1xi32, #tpu.memory_space<vmem>>, %arg7: memref<1x1x128xf32, #tpu.memory_space<vmem>>, %arg8: memref<1x16x128xf32, #tpu.memory_space<vmem>>, %arg9: memref<1x1x16xf32, #tpu.memory_space<vmem>>) attributes {dimension_semantics = [#tpu.dimension_semantics<parallel>, #tpu.dimension_semantics<arbitrary>], iteration_bounds = array<i64: 2, 1>, scalar_prefetch = 0 : i64, scratch_operands = 0 : i64, tpu.core_type = #tpu.core_type<tc>, window_params = [{transform_indices = @transform_0, window_bounds = array<i64: 256, 16>}, {pipeline_mode = #tpu.pipeline_mode<synchronous>, transform_indices = @transform_1, window_bounds = array<i64: 16, 128>}, {pipeline_mode = #tpu.pipeline_mode<synchronous>, transform_indices = @transform_2, window_bounds = array<i64: 1, 128>}, {transform_indices = @transform_3, window_bounds = array<i64: 256, 16>}, {transform_indices = @transform_4, window_bounds = array<i64: 256, 1>}, {transform_indices = @transform_5, window_bounds = array<i64: 1, 1, 128>}, {transform_indices = @transform_6, window_bounds = array<i64: 1, 16, 128>}, {transform_indices = @transform_7, window_bounds = array<i64: 1, 1, 16>}]} {
    %c0_i32 = arith.constant 0 : i32
    %0 = arith.cmpi eq, %arg1, %c0_i32 : i32
    %1 = arith.extui %0 : i1 to i32
    %c0_i32_0 = arith.constant 0 : i32
    %2 = arith.cmpi ne, %1, %c0_i32_0 : i32
    scf.if %2 {
      %cst_35 = arith.constant 0.000000e+00 : f32
      %46 = vector.broadcast %cst_35 : f32 to vector<1x1x128xf32>
      %c0_36 = arith.constant 0 : index
      %c0_37 = arith.constant 0 : index
      %c0_38 = arith.constant 0 : index
      %47 = vector.load %arg7[%c0_36, %c0_37, %c0_38] : memref<1x1x128xf32, #tpu.memory_space<vmem>>, vector<1x1x128xf32>
      tpu.vector_store %arg7[%c0_36, %c0_37, %c0_38], %46 {strides = array<i32>} : memref<1x1x128xf32, #tpu.memory_space<vmem>>, vector<1x1x128xf32>,
      %cst_39 = arith.constant 0.000000e+00 : f32
      %48 = vector.broadcast %cst_39 : f32 to vector<1x16x128xf32>
      %c0_40 = arith.constant 0 : index
      %c0_41 = arith.constant 0 : index
      %c0_42 = arith.constant 0 : index
      %49 = vector.load %arg8[%c0_40, %c0_41, %c0_42] : memref<1x16x128xf32, #tpu.memory_space<vmem>>, vector<1x16x128xf32>
      tpu.vector_store %arg8[%c0_40, %c0_41, %c0_42], %48 {strides = array<i32>} : memref<1x16x128xf32, #tpu.memory_space<vmem>>, vector<1x16x128xf32>,
      %cst_43 = arith.constant 0.000000e+00 : f32
      %50 = vector.broadcast %cst_43 : f32 to vector<1x1x16xf32>
      %c0_44 = arith.constant 0 : index
      %c0_45 = arith.constant 0 : index
      %c0_46 = arith.constant 0 : index
      %51 = vector.load %arg9[%c0_44, %c0_45, %c0_46] : memref<1x1x16xf32, #tpu.memory_space<vmem>>, vector<1x1x16xf32>
      tpu.vector_store %arg9[%c0_44, %c0_45, %c0_46], %50 {strides = array<i32>} : memref<1x1x16xf32, #tpu.memory_space<vmem>>, vector<1x1x16xf32>,
    } else {
    }
    %c0 = arith.constant 0 : index
    %c0_1 = arith.constant 0 : index
    %3 = vector.load %arg2[%c0, %c0_1] : memref<256x16xf32, #tpu.memory_space<vmem>>, vector<256x16xf32>
    %c0_2 = arith.constant 0 : index
    %c0_3 = arith.constant 0 : index
    %4 = vector.load %arg3[%c0_2, %c0_3] : memref<16x128xf32, #tpu.memory_space<vmem>>, vector<16x128xf32>
    %c0_4 = arith.constant 0 : index
    %c0_5 = arith.constant 0 : index
    %5 = vector.load %arg4[%c0_4, %c0_5] : memref<1x128xf32, #tpu.memory_space<vmem>>, vector<1x128xf32>
    %cst = arith.constant dense<0.000000e+00> : vector<256x128xf32>
    %6 = tpu.matmul %3, %4, %cst {dimension_numbers = #tpu.dot_dimension_numbers<[1], [0], [0], [1], [0, 0, 1, 1], [], []>} : vector<256x16xf32>, vector<16x128xf32>, vector<256x128xf32> -> vector<256x128xf32>
    %cst_6 = arith.constant 2.000000e+00 : f32
    %7 = vector.broadcast %cst_6 : f32 to vector<256x128xf32>
    %8 = arith.mulf %7, %6 : vector<256x128xf32>
    %9 = vector.broadcast %5 : vector<1x128xf32> to vector<256x128xf32>
    %10 = arith.subf %9, %8 : vector<256x128xf32>
    %11 = tpu.iota {dimensions = array<i32: 1>} : vector<256x128xi32>
    %cst_7 = arith.constant dense<0x7F800000> : vector<256xf32>
    %12 = vector.multi_reduction <minimumf>, %10, %cst_7 [1] : vector<256x128xf32> to vector<256xf32>
    %13 = vector.shape_cast %12 : vector<256xf32> to vector<256x1xf32>
    %14 = vector.broadcast %13 : vector<256x1xf32> to vector<256x128xf32>
    %15 = arith.cmpf ole, %10, %14 : vector<256x128xf32>
    %c128_i32 = arith.constant 128 : i32
    %16 = vector.broadcast %c128_i32 : i32 to vector<256x128xi32>
    %17 = arith.select %15, %11, %16 : vector<256x128xi1>, vector<256x128xi32>
    %cst_8 = arith.constant dense<2147483647> : vector<256xi32>
    %18 = vector.multi_reduction <minsi>, %17, %cst_8 [1] : vector<256x128xi32> to vector<256xi32>
    %19 = vector.shape_cast %18 : vector<256xi32> to vector<256x1xi32>
    %c0_9 = arith.constant 0 : index
    %c0_10 = arith.constant 0 : index
    %20 = vector.load %arg6[%c0_9, %c0_10] : memref<256x1xi32, #tpu.memory_space<vmem>>, vector<256x1xi32>
    tpu.vector_store %arg6[%c0_9, %c0_10], %19 {strides = array<i32>} : memref<256x1xi32, #tpu.memory_space<vmem>>, vector<256x1xi32>,
    %21 = vector.broadcast %19 : vector<256x1xi32> to vector<256x128xi32>
    %22 = arith.cmpi eq, %11, %21 : vector<256x128xi32>
    %23 = arith.extui %22 : vector<256x128xi1> to vector<256x128xi32>
    %24 = arith.sitofp %23 : vector<256x128xi32> to vector<256x128xf32>
    %cst_11 = arith.constant dense<0.000000e+00> : vector<256x16xf32>
    %25 = tpu.matmul %24, %4, %cst_11 {dimension_numbers = #tpu.dot_dimension_numbers<[1], [1], [0], [0], [0, 0, 1, 0], [], []>} : vector<256x128xf32>, vector<16x128xf32>, vector<256x16xf32> -> vector<256x16xf32>
    %c0_12 = arith.constant 0 : index
    %c0_13 = arith.constant 0 : index
    %26 = vector.load %arg5[%c0_12, %c0_13] : memref<256x16xf32, #tpu.memory_space<vmem>>, vector<256x16xf32>
    tpu.vector_store %arg5[%c0_12, %c0_13], %25 {strides = array<i32>} : memref<256x16xf32, #tpu.memory_space<vmem>>, vector<256x16xf32>,
    %27 = arith.subf %25, %3 : vector<256x16xf32>
    %c0_14 = arith.constant 0 : index
    %c0_15 = arith.constant 0 : index
    %c0_16 = arith.constant 0 : index
    %28 = vector.load %arg9[%c0_14, %c0_15, %c0_16] : memref<1x1x16xf32, #tpu.memory_space<vmem>>, vector<1x1x16xf32>
    %29 = arith.mulf %27, %27 : vector<256x16xf32>
    %cst_17 = arith.constant dense<0.000000e+00> : vector<16xf32>
    %30 = vector.multi_reduction <add>, %29, %cst_17 [0] : vector<256x16xf32> to vector<16xf32>
    %31 = vector.shape_cast %30 : vector<16xf32> to vector<1x16xf32>
    %32 = vector.shape_cast %31 : vector<1x16xf32> to vector<1x1x16xf32>
    %33 = arith.addf %28, %32 : vector<1x1x16xf32>
    %c0_18 = arith.constant 0 : index
    %c0_19 = arith.constant 0 : index
    %c0_20 = arith.constant 0 : index
    %34 = vector.load %arg9[%c0_18, %c0_19, %c0_20] : memref<1x1x16xf32, #tpu.memory_space<vmem>>, vector<1x1x16xf32>
    tpu.vector_store %arg9[%c0_18, %c0_19, %c0_20], %33 {strides = array<i32>} : memref<1x1x16xf32, #tpu.memory_space<vmem>>, vector<1x1x16xf32>,
    %c0_21 = arith.constant 0 : index
    %c0_22 = arith.constant 0 : index
    %c0_23 = arith.constant 0 : index
    %35 = vector.load %arg7[%c0_21, %c0_22, %c0_23] : memref<1x1x128xf32, #tpu.memory_space<vmem>>, vector<1x1x128xf32>
    %cst_24 = arith.constant dense<0.000000e+00> : vector<128xf32>
    %36 = vector.multi_reduction <add>, %24, %cst_24 [0] : vector<256x128xf32> to vector<128xf32>
    %37 = vector.shape_cast %36 : vector<128xf32> to vector<1x128xf32>
    %38 = vector.shape_cast %37 : vector<1x128xf32> to vector<1x1x128xf32>
    %39 = arith.addf %35, %38 : vector<1x1x128xf32>
    %c0_25 = arith.constant 0 : index
    %c0_26 = arith.constant 0 : index
    %c0_27 = arith.constant 0 : index
    %40 = vector.load %arg7[%c0_25, %c0_26, %c0_27] : memref<1x1x128xf32, #tpu.memory_space<vmem>>, vector<1x1x128xf32>
    tpu.vector_store %arg7[%c0_25, %c0_26, %c0_27], %39 {strides = array<i32>} : memref<1x1x128xf32, #tpu.memory_space<vmem>>, vector<1x1x128xf32>,
    %c0_28 = arith.constant 0 : index
    %c0_29 = arith.constant 0 : index
    %c0_30 = arith.constant 0 : index
    %41 = vector.load %arg8[%c0_28, %c0_29, %c0_30] : memref<1x16x128xf32, #tpu.memory_space<vmem>>, vector<1x16x128xf32>
    %cst_31 = arith.constant dense<0.000000e+00> : vector<16x128xf32>
    %42 = tpu.matmul %3, %24, %cst_31 {dimension_numbers = #tpu.dot_dimension_numbers<[0], [0], [1], [1], [0, 1, 1, 1], [], []>} : vector<256x16xf32>, vector<256x128xf32>, vector<16x128xf32> -> vector<16x128xf32>
    %43 = vector.shape_cast %42 : vector<16x128xf32> to vector<1x16x128xf32>
    %44 = arith.addf %41, %43 : vector<1x16x128xf32>
    %c0_32 = arith.constant 0 : index
    %c0_33 = arith.constant 0 : index
    %c0_34 = arith.constant 0 : index
    %45 = vector.load %arg8[%c0_32, %c0_33, %c0_34] : memref<1x16x128xf32, #tpu.memory_space<vmem>>, vector<1x16x128xf32>
    tpu.vector_store %arg8[%c0_32, %c0_33, %c0_34], %44 {strides = array<i32>} : memref<1x16x128xf32, #tpu.memory_space<vmem>>, vector<1x16x128xf32>,
    return
  }
  func.func @transform_0(%arg0: i32, %arg1: i32) -> (i32, i32) {
    %c1_i32 = arith.constant 1 : i32
    %0 = arith.muli %arg0, %c1_i32 : i32
    %1 = arith.addi %0, %arg1 : i32
    %c0_i32 = arith.constant 0 : i32
    %c0_i32_0 = arith.constant 0 : i32
    return %1, %c0_i32 : i32, i32
  }
  func.func @transform_1(%arg0: i32, %arg1: i32) -> (i32, i32) {
    %c0_i32 = arith.constant 0 : i32
    %c0_i32_0 = arith.constant 0 : i32
    %c0_i32_1 = arith.constant 0 : i32
    return %c0_i32, %c0_i32_0 : i32, i32
  }
  func.func @transform_2(%arg0: i32, %arg1: i32) -> (i32, i32) {
    %c0_i32 = arith.constant 0 : i32
    %c0_i32_0 = arith.constant 0 : i32
    %c0_i32_1 = arith.constant 0 : i32
    return %c0_i32, %c0_i32_0 : i32, i32
  }
  func.func @transform_3(%arg0: i32, %arg1: i32) -> (i32, i32) {
    %c1_i32 = arith.constant 1 : i32
    %0 = arith.muli %arg0, %c1_i32 : i32
    %1 = arith.addi %0, %arg1 : i32
    %c0_i32 = arith.constant 0 : i32
    %c0_i32_0 = arith.constant 0 : i32
    return %1, %c0_i32 : i32, i32
  }
  func.func @transform_4(%arg0: i32, %arg1: i32) -> (i32, i32) {
    %c1_i32 = arith.constant 1 : i32
    %0 = arith.muli %arg0, %c1_i32 : i32
    %1 = arith.addi %0, %arg1 : i32
    %c0_i32 = arith.constant 0 : i32
    %c0_i32_0 = arith.constant 0 : i32
    return %1, %c0_i32 : i32, i32
  }
  func.func @transform_5(%arg0: i32, %arg1: i32) -> (i32, i32, i32) {
    %c0_i32 = arith.constant 0 : i32
    %c0_i32_0 = arith.constant 0 : i32
    %c0_i32_1 = arith.constant 0 : i32
    return %arg0, %c0_i32, %c0_i32_0 : i32, i32, i32
  }
  func.func @transform_6(%arg0: i32, %arg1: i32) -> (i32, i32, i32) {
    %c0_i32 = arith.constant 0 : i32
    %c0_i32_0 = arith.constant 0 : i32
    %c0_i32_1 = arith.constant 0 : i32
    return %arg0, %c0_i32, %c0_i32_0 : i32, i32, i32
  }
  func.func @transform_7(%arg0: i32, %arg1: i32) -> (i32, i32, i32) {
    %c0_i32 = arith.constant 0 : i32
    %c0_i32_0 = arith.constant 0 : i32
    %c0_i32_1 = arith.constant 0 : i32
    return %arg0, %c0_i32, %c0_i32_0 : i32, i32, i32
  }
}

</mosaic_0001>

<bundles_post_ra>
// kernel: tpu_custom_call.1
= control target key start
LH: loop header
LB: loop body
LE: loop exit
PB: predicated region body
PF: predicated region fallthrough
CT: control target
= control target key end

     0   :  { %s4173_s0 = inlined_call_operand.vmem [shape: f32[512,16], index: 0, kind: input, shape index: {}]   ;;  %s4174_s1 = inlined_call_operand.vmem [shape: f32[16,128], index: 1, kind: input, shape index: {}]   ;;  %s4175_s2 = inlined_call_operand.vmem [shape: f32[1,128], index: 2, kind: input, shape index: {}]   ;;  %s4176_s3 = inlined_call_operand.vmem [shape: f32[512,16], index: 3, kind: output, shape index: {0}]   ;;  %s4177_s4 = inlined_call_operand.vmem [shape: s32[512,1], index: 4, kind: output, shape index: {1}]   ;;  %s4178_s5 = inlined_call_operand.hbm [shape: f32[2,1,128], index: 5, kind: output, shape index: {2}]   ;;  %s4179_s6 = inlined_call_operand.hbm [shape: f32[2,16,128], index: 6, kind: output, shape index: {3}]   ;;  %s4180_s7 = inlined_call_operand.hbm [shape: f32[2,1,16], index: 7, kind: output, shape index: {4}]  }
   0x1   :  { %4197 = sst [smem:[#allocation13_spill]] %s4173_s0 }
   0x2   :  { %13 = vsyncpa [#allocation3], 0 }
   0x3   :  { %15 = vsyncpa [#allocation3 + $0x1], 0 }
   0x4   :  { %16 = vsyncpa [#allocation5], 0 }
   0x5   :  { %18 = vsyncpa [#allocation5 + $0x1], 0  ;;  %s2545_s24 = smov 0   ;;  %s2547_s25 = smov 0  }
   0x6   :  { %s2549_s26 = smov 0   ;;  %s2551_s27 = smov 0  }
   0x7   :  { %s2553_s28 = smov 0   ;;  %s2555_s29 = smov 0  }
   0x8 LB: > { %s4196_s30 = sadd.s32 4294967295, %s2497_s29   ;;  %s4195_s8 = sadd.s32 4294967294, %s2497_s29   ;;  %s2497_s29 = sphi %s2555_s29, %s24_s29   ;;  %s2493_s28 = sphi %s2553_s28, %s4233_s28   ;;  %s2489_s27 = sphi %s2551_s27, %s4232_s27   ;;  %s2485_s26 = sphi %s2549_s26, %s4231_s26   ;;  %s2481_s25 = sphi %s2547_s25, %s4230_s25   ;;  %s2477_s24 = sphi %s2545_s24, %s4229_s24  }
   0x9   : > { %s36_s9 = sadd.s32 1, %s2493_s28  ;;  %s169_s10 = sadd.s32 1, %s2485_s26 }
   0xa   : > { %p38_p0 = scmp.ge.s32.totalorder %s36_s9, 2  ;;  %p179_p1 = scmp.ne.s32.totalorder %s2485_s26, %s2481_s25 }
   0xb   : > { %p180_p2 = scmp.eq.s32.totalorder %s4196_s30, 1  ;;  %p185_p3 = scmp.ne.s32.totalorder %s2481_s25, %s2477_s24 }
   0xc   : > { %s4235_s9 = smov (%p38_p0, %s36_s9), 0  ;;  %p186_p5 = scmp.eq.s32.totalorder %s4195_s8, 1 }
   0xd   : > { %p2587_p4 = por %p180_p2, %p179_p1  ;;  %s166_s12 = ssub.s32 %s2493_s28, %s4235_s9 }
   0xe   : > { %p2067_p6 = scmp.ge.s32.totalorder %s2497_s29, 1  ;;  %p167_p7 = scmp.eq.s32.totalorder %s166_s12, 0 }
   0xf   : > { %p2596_p8 = por %p186_p5, %p185_p3  ;;  %p273_p9 = scmp.lt.s32.totalorder %s2497_s29, 3 }
  0x10   : > { %s2602_s14 = scalar_select %p167_p7, %s2485_s26, %s169_s10  }
  0x11   : > { %p274_p10 = pnand %p2067_p6, %p273_p9 }
  0x13   : > { %277 = sbr.rel (%p274_p10) target bundleno = 994 (0x3e2), region = 32 }
  0x18   : > { %v392_v0 = vld [vmem:[%s4174_s1 + $0x8] sm:$0xff]  ;;  %v391_v1 = vld [vmem:[%s4174_s1] sm:$0xff]  ;;  %s2069_s19 = sshll.u32 %s2489_s27, 5  ;;  %vm394_vm0 = vcmask 130048   ;;  %s4200_s0 = sld [smem:[#allocation13_spill]] }
  0x19   : > { %505 = vmatpush.msra.mxu0 %v392_v0  ;;  %2209 = vmatpush.msra.mxu3 %v392_v0  ;;  %p328_p11 = scmp.lt.s32.totalorder %s2069_s19, 63  ;;  %v2716_v34 = vld [vmem:[%s4175_s2] ss:$0 sm:$0xff]  ;;  %s1856_s15 = scalar_lea.hbm %s4178_s5, %s2489_s27 }
  0x1a   : > { %1392 = vmatpush.xpose.msra.mxu1 %v392_v0  ;;  %2211 = vmatpush.xpose.msra.mxu2 %v392_v0  ;;  %s2379_s10 = scalar_lea.hbm %s4178_s5, 2 }
  0x1b   : > { %506 = vmatpush.msra.mxu0 %v391_v1  ;;  %2210 = vmatpush.msra.mxu3 %v391_v1  ;;  %s4237_s19 = smov (!%p328_p11, %s2069_s19), 63 }
  0x1c   : > { %s2611_s20 = sshll.u32 %s4237_s19, 3 }
  0x1d   : > { %s3207_s17 = scalar_lea.vmem %s4177_s4, %s2611_s20  ;;  %s3497_s21 = scalar_lea.vmem %s4176_s3, %s2611_s20 }
  0x1e   : > { %s2617_s23 = scalar_lea.vmem %s4200_s0, %s2611_s20  ;;  %1393 = vmatpush.xpose.msra.mxu1 %v391_v1  ;;  %2212 = vmatpush.xpose.msra.mxu2 %v391_v1  ;;  %s3585_s20 = sand.u32 1, %s2481_s25  }
  0x1f   : > { %v2620_v2 = vld [vmem:[%s2617_s23] sm:$0xff]  ;;  %v2623_v3 = vld [vmem:[%s2617_s23 + $0x90] sm:$0xff]  ;;  %v2630_v4 = vld [vmem:[%s2617_s23 + $0x8] sm:$0xff]  ;;  %s3614_s22 = scalar_lea.vmem [#allocation2], %s3585_s20  ;;  %s1829_s18 = scalar_lea.sflag [#allocation3], %s3585_s20 }
  0x20   : > { %2075 = vmatmul.msk.f32.vlgmr.msra.gmra.mxu0 %vm394_vm0, %v2620_v2  ;;  %2093 = vmatmul.msk.f32.vlgmr.msra.gmra.mxu3 %vm394_vm0, %v2623_v3  ;;  %v2633_v5 = vld [vmem:[%s2617_s23 + $0x98] sm:$0xff]  ;;  %v2640_v6 = vld [vmem:[%s2617_s23 + $0x10] sm:$0xff]  ;;  %v2643_v7 = vld [vmem:[%s2617_s23 + $0xa0] sm:$0xff]  ;;  %s1858_s16 = sshll.u32 %s3614_s22, 4  ;;  %s1859_s16 = int_to_ptr.vmem [resolvable:$true] %s1858_s16 }
  0x21   : > { %v2650_v8 = vld [vmem:[%s2617_s23 + $0x18] sm:$0xff]  ;;  %v380_v9 = vld [vmem:[%s2617_s23 + $0xa8] sm:$0xff]  ;;  %v2657_v10 = vld [vmem:[%s2617_s23 + $0x20] sm:$0xff] }
  0x22   : > { %v381_v11 = vld [vmem:[%s2617_s23 + $0xb0] sm:$0xff]  ;;  %v364_v12 = vld [vmem:[%s2617_s23 + $0x28] sm:$0xff]  ;;  %v382_v13 = vld [vmem:[%s2617_s23 + $0xb8] sm:$0xff] }
  0x23   : > { %v365_v14 = vld [vmem:[%s2617_s23 + $0x30] sm:$0xff]  ;;  %v383_v15 = vld [vmem:[%s2617_s23 + $0xc0] sm:$0xff]  ;;  %v366_v16 = vld [vmem:[%s2617_s23 + $0x38] sm:$0xff] }
  0x24   : > { %v384_v17 = vld [vmem:[%s2617_s23 + $0xc8] sm:$0xff]  ;;  %v367_v18 = vld [vmem:[%s2617_s23 + $0x40] sm:$0xff]  ;;  %v385_v19 = vld [vmem:[%s2617_s23 + $0xd0] sm:$0xff] }
  0x25   : > { %v368_v20 = vld [vmem:[%s2617_s23 + $0x48] sm:$0xff]  ;;  %v386_v21 = vld [vmem:[%s2617_s23 + $0xd8] sm:$0xff]  ;;  %v389_v23 = vld [vmem:[%s2617_s23 + $0xf0] sm:$0xff] }
  0x26   : > { %v390_v22 = vld [vmem:[%s2617_s23 + $0xf8] sm:$0xff]  ;;  %v388_v24 = vld [vmem:[%s2617_s23 + $0xe8] sm:$0xff]  ;;  %v369_v25 = vld [vmem:[%s2617_s23 + $0x50] sm:$0xff] }
  0x27   : > { %2238 = vmatpush.lsf.msrb.mxu3 %v390_v22  ;;  %v387_v26 = vld [vmem:[%s2617_s23 + $0xe0] sm:$0xff]  ;;  %v374_v27 = vld [vmem:[%s2617_s23 + $0x78] sm:$0xff]  ;;  %v373_v28 = vld [vmem:[%s2617_s23 + $0x70] sm:$0xff] }
  0x28   : > { %2076 = vmatmul.msk.f32.gmra.mxu0 %vm394_vm0, %v2630_v4  ;;  %2094 = vmatmul.msk.f32.gmra.mxu3 %vm394_vm0, %v2633_v5  ;;  %v372_v29 = vld [vmem:[%s2617_s23 + $0x68] sm:$0xff]  ;;  %v370_v30 = vld [vmem:[%s2617_s23 + $0x58] sm:$0xff]  ;;  %v371_v31 = vld [vmem:[%s2617_s23 + $0x60] sm:$0xff] }
  0x29   : > { %2239 = vmatpush.lsf.msrb.mxu3 %v389_v23  ;;  %2216 = vmatpush.lsf.msrb.mxu2 %v374_v27  ;;  %v376_v32 = vld [vmem:[%s2617_s23 + $0x88] sm:$0xff]  ;;  %v375_v33 = vld [vmem:[%s2617_s23 + $0x80] sm:$0xff] }
  0x2b   : > { %2240 = vmatpush.lsf.msrb.mxu3 %v388_v24  ;;  %2217 = vmatpush.lsf.msrb.mxu2 %v373_v28 }
  0x2d   : > { %2241 = vmatpush.lsf.msrb.mxu3 %v387_v26  ;;  %2218 = vmatpush.lsf.msrb.mxu2 %v372_v29 }
  0x2f   : > { %2242 = vmatpush.lsf.msrb.mxu3 %v386_v21  ;;  %2219 = vmatpush.lsf.msrb.mxu2 %v371_v31 }
  0x30   : > { %2077 = vmatmul.msk.f32.gmra.mxu0 %vm394_vm0, %v2640_v6  ;;  %2095 = vmatmul.msk.f32.gmra.mxu3 %vm394_vm0, %v2643_v7 }
  0x31   : > { %2243 = vmatpush.lsf.msrb.mxu3 %v385_v19  ;;  %2220 = vmatpush.lsf.msrb.mxu2 %v370_v30 }
  0x33   : > { %2244 = vmatpush.lsf.msrb.mxu3 %v384_v17  ;;  %2221 = vmatpush.lsf.msrb.mxu2 %v369_v25 }
  0x35   : > { %2245 = vmatpush.lsf.msrb.mxu3 %v383_v15  ;;  %2222 = vmatpush.lsf.msrb.mxu2 %v368_v20 }
  0x37   : > { %2246 = vmatpush.lsf.msrb.mxu3 %v382_v13  ;;  %2223 = vmatpush.lsf.msrb.mxu2 %v367_v18 }
  0x38   : > { %2078 = vmatmul.msk.f32.gmra.mxu0 %vm394_vm0, %v2650_v8  ;;  %2096 = vmatmul.msk.f32.gmra.mxu3 %vm394_vm0, %v380_v9 }
  0x39   : > { %2247 = vmatpush.lsf.msrb.mxu3 %v381_v11  ;;  %2224 = vmatpush.lsf.msrb.mxu2 %v366_v16 }
  0x3b   : > { %2248 = vmatpush.lsf.msrb.mxu3 %v380_v9  ;;  %2225 = vmatpush.lsf.msrb.mxu2 %v365_v14 }
  0x3d   : > { %2249 = vmatpush.lsf.msrb.mxu3 %v2643_v7  ;;  %2226 = vmatpush.lsf.msrb.mxu2 %v364_v12 }
  0x3f   : > { %2250 = vmatpush.lsf.msrb.mxu3 %v2633_v5  ;;  %2227 = vmatpush.lsf.msrb.mxu2 %v2657_v10 }
  0x40   : > { %2079 = vmatmul.msk.f32.gmra.mxu0 %vm394_vm0, %v2657_v10  ;;  %2097 = vmatmul.msk.f32.gmra.mxu3 %vm394_vm0, %v381_v11 }
  0x41   : > { %2251 = vmatpush.lsf.msrb.mxu3 %v2623_v3  ;;  %2228 = vmatpush.lsf.msrb.mxu2 %v2650_v8 }
  0x43   : > { %2229 = vmatpush.lsf.msrb.mxu2 %v2640_v6  ;;  %2252 = vmatpush.lsf.msrb.mxu3 %v376_v32 }
  0x45   : > { %2230 = vmatpush.lsf.msrb.mxu2 %v2630_v4  ;;  %2253 = vmatpush.lsf.msrb.mxu3 %v375_v33 }
  0x47   : > { %2231 = vmatpush.lsf.msrb.mxu2 %v2620_v2 }
  0x48   : > { %2080 = vmatmul.msk.f32.gmra.mxu0 %vm394_vm0, %v364_v12  ;;  %2098 = vmatmul.msk.f32.gmra.mxu3 %vm394_vm0, %v382_v13 }
  0x49   : > { %2232 = vllmr.2.mxu2 }
  0x50   : > { %2081 = vmatmul.msk.f32.gmra.mxu0 %vm394_vm0, %v365_v14  ;;  %2099 = vmatmul.msk.f32.gmra.mxu3 %vm394_vm0, %v383_v15 }
  0x58   : > { %2082 = vmatmul.msk.f32.gmra.mxu0 %vm394_vm0, %v366_v16  ;;  %2100 = vmatmul.msk.f32.gmra.mxu3 %vm394_vm0, %v384_v17 }
  0x60   : > { %2083 = vmatmul.msk.f32.gmra.mxu0 %vm394_vm0, %v367_v18  ;;  %2101 = vmatmul.msk.f32.gmra.mxu3 %vm394_vm0, %v385_v19 }
  0x68   : > { %2084 = vmatmul.msk.f32.gmra.mxu0 %vm394_vm0, %v368_v20  ;;  %2102 = vmatmul.msk.f32.gmra.mxu3 %vm394_vm0, %v386_v21 }
  0x70   : > { %2085 = vmatmul.msk.f32.gmra.mxu0 %vm394_vm0, %v369_v25  ;;  %2103 = vmatmul.msk.f32.gmra.mxu3 %vm394_vm0, %v387_v26 }
  0x78   : > { %2086 = vmatmul.msk.f32.gmra.mxu0 %vm394_vm0, %v370_v30  ;;  %2104 = vmatmul.msk.f32.gmra.mxu3 %vm394_vm0, %v388_v24 }
  0x80   : > { %2087 = vmatmul.msk.f32.gmra.mxu0 %vm394_vm0, %v371_v31  ;;  %2105 = vmatmul.msk.f32.gmra.mxu3 %vm394_vm0, %v389_v23 }
  0x88   : > { %2088 = vmatmul.msk.f32.gmra.mxu0 %vm394_vm0, %v372_v29  ;;  %2106 = vmatmul.msk.f32.gmra.mxu3 %vm394_vm0, %v390_v22 }
  0x8f   : > { %2254 = vllmr.2.mxu3 }
  0x90   : > { %2089 = vmatmul.msk.f32.gmra.mxu0 %vm394_vm0, %v373_v28 }
  0x98   : > { %2090 = vmatmul.msk.f32.gmra.mxu0 %vm394_vm0, %v374_v27 }
  0x9d   : > { %v508_v35 = vpop.f32.mrf.mxu0 }
  0x9e   : > { %v604_v36 = vmul.f32 2.0, %v508_v35 }
  0xa0   : > { %v2719_v37 = vsub.f32 %v2716_v34, %v604_v36  ;;  %2091 = vmatmul.msk.f32.gmra.mxu0 %vm394_vm0, %v375_v33 }
  0xa2   : > { %673 = vmin.xlane.f32.xlu0 %v2719_v37 }
  0xa3   : > { %v562_v38 = vpop.f32.mrf.mxu3 }
  0xa4   : > { %v622_v39 = vmul.f32 2.0, %v562_v38 }
  0xa5   : > { %v511_v40 = vpop.f32.mrf.mxu0 }
  0xa6   : > { %v605_v41 = vmul.f32 2.0, %v511_v40  ;;  %v2724_v42 = vsub.f32 %v2716_v34, %v622_v39 }
  0xa8   : > { %709 = vmin.xlane.f32.xlu2 %v2724_v42  ;;  %v2728_v43 = vsub.f32 %v2716_v34, %v605_v41  ;;  %2092 = vmatmul.msk.f32.gmra.mxu0 %vm394_vm0, %v376_v32 }
  0xaa   : > { %675 = vmin.xlane.f32.xlu0 %v2728_v43 }
  0xab   : > { %v565_v44 = vpop.f32.mrf.mxu3 }
  0xac   : > { %v623_v45 = vmul.f32 2.0, %v565_v44 }
  0xad   : > { %v514_v46 = vpop.f32.mrf.mxu0 }
  0xae   : > { %v606_v47 = vmul.f32 2.0, %v514_v46  ;;  %v2733_v48 = vsub.f32 %v2716_v34, %v623_v45 }
  0xb0   : > { %711 = vmin.xlane.f32.xlu2 %v2733_v48  ;;  %v2737_v49 = vsub.f32 %v2716_v34, %v606_v47 }
  0xb2   : > { %677 = vmin.xlane.f32.xlu1 %v2737_v49 }
  0xb3   : > { %v568_v50 = vpop.f32.mrf.mxu3 }
  0xb4   : > { %v624_v51 = vmul.f32 2.0, %v568_v50 }
  0xb5   : > { %v517_v52 = vpop.f32.mrf.mxu0 }
  0xb6   : > { %v607_v53 = vmul.f32 2.0, %v517_v52  ;;  %v2741_v54 = vsub.f32 %v2716_v34, %v624_v51 }
  0xb8   : > { %713 = vmin.xlane.f32.xlu2 %v2741_v54  ;;  %v2745_v55 = vsub.f32 %v2716_v34, %v607_v53 }
  0xba   : > { %679 = vmin.xlane.f32.xlu1 %v2745_v55 }
  0xbb   : > { %v571_v56 = vpop.f32.mrf.mxu3 }
  0xbc   : > { %v625_v57 = vmul.f32 2.0, %v571_v56 }
  0xbd   : > { %v520_v58 = vpop.f32.mrf.mxu0 }
  0xbe   : > { %v2749_v59 = vsub.f32 %v2716_v34, %v625_v57  ;;  %v608_v60 = vmul.f32 2.0, %v520_v58 }
  0xc0   : > { %715 = vmin.xlane.f32.xlu2 %v2749_v59  ;;  %v2753_v62 = vsub.f32 %v2716_v34, %v608_v60  ;;  %v671_v60 = vlaneseq }
  0xc3   : > { %v574_v61 = vpop.f32.mrf.mxu3 }
  0xc4   : > { %v626_v0 = vmul.f32 2.0, %v574_v61 }
  0xc5   : > { %v523_v63 = vpop.f32.mrf.mxu0 }
  0xc6   : > { %v2760_v6 = vsub.f32 %v2716_v34, %v626_v0  ;;  %v609_v8 = vmul.f32 2.0, %v523_v63  ;;  %v2828_v0 = vand.u32 127, %v671_v60 }
  0xc8   : > { %681 = vmin.xlane.f32.xlu2 %v2753_v62  ;;  %v2769_v12 = vsub.f32 %v2716_v34, %v609_v8 }
  0xcb   : > { %v577_v1 = vpop.f32.mrf.mxu3 }
  0xcc   : > { %v627_v2 = vmul.f32 2.0, %v577_v1 }
  0xcd   : > { %v526_v3 = vpop.f32.mrf.mxu0 }
  0xce   : > { %v610_v4 = vmul.f32 2.0, %v526_v3  ;;  %v2757_v5 = vsub.f32 %v2716_v34, %v627_v2 }
  0xd0   : > { %719 = vmin.xlane.f32.xlu0 %v2757_v5  ;;  %717 = vmin.xlane.f32.xlu2 %v2760_v6  ;;  %v2765_v7 = vsub.f32 %v2716_v34, %v610_v4 }
  0xd2   : > { %685 = vmin.xlane.f32.xlu1 %v2765_v7 }
  0xd3   : > { %v580_v9 = vpop.f32.mrf.mxu3 }
  0xd4   : > { %v628_v14 = vmul.f32 2.0, %v580_v9 }
  0xd5   : > { %v529_v10 = vpop.f32.mrf.mxu0 }
  0xd6   : > { %v611_v11 = vmul.f32 2.0, %v529_v10  ;;  %v2777_v18 = vsub.f32 %v2716_v34, %v628_v14 }
  0xd8   : > { %683 = vmin.xlane.f32.xlu2 %v2769_v12  ;;  %v2773_v13 = vsub.f32 %v2716_v34, %v611_v11 }
  0xda   : > { %687 = vmin.xlane.f32.xlu1 %v2773_v13 }
  0xdb   : > { %v583_v15 = vpop.f32.mrf.mxu3 }
  0xdc   : > { %v629_v16 = vmul.f32 2.0, %v583_v15 }
  0xdd   : > { %v532_v17 = vpop.f32.mrf.mxu0 }
  0xde   : > { %v2781_v19 = vsub.f32 %v2716_v34, %v629_v16  ;;  %v612_v21 = vmul.f32 2.0, %v532_v17 }
  0xe0   : > { %721 = vmin.xlane.f32.xlu2 %v2777_v18  ;;  %v2789_v25 = vsub.f32 %v2716_v34, %v612_v21 }
  0xe2   : > { %723 = vmin.xlane.f32.xlu1 %v2781_v19 }
  0xe3   : > { %v586_v20 = vpop.f32.mrf.mxu3 }
  0xe4   : > { %v630_v22 = vmul.f32 2.0, %v586_v20 }
  0xe5   : > { %v535_v23 = vpop.f32.mrf.mxu0 }
  0xe6   : > { %v2785_v24 = vsub.f32 %v2716_v34, %v630_v22  ;;  %v613_v27 = vmul.f32 2.0, %v535_v23 }
  0xe8   : > { %725 = vmin.xlane.f32.xlu0 %v2785_v24  ;;  %v2797_v31 = vsub.f32 %v2716_v34, %v613_v27 }
  0xea   : > { %689 = vmin.xlane.f32.xlu1 %v2789_v25 }
  0xeb   : > { %v589_v26 = vpop.f32.mrf.mxu3 }
  0xec   : > { %v631_v28 = vmul.f32 2.0, %v589_v26 }
  0xed   : > { %v538_v29 = vpop.f32.mrf.mxu0 }
  0xee   : > { %v2793_v30 = vsub.f32 %v2716_v34, %v631_v28  ;;  %v614_v33 = vmul.f32 2.0, %v538_v29 }
  0xf0   : > { %727 = vmin.xlane.f32.xlu2 %v2793_v30  ;;  %v2801_v36 = vsub.f32 %v2716_v34, %v614_v33 }
  0xf2   : > { %691 = vmin.xlane.f32.xlu1 %v2797_v31 }
  0xf3   : > { %v592_v32 = vpop.f32.mrf.mxu3 }
  0xf4   : > { %v632_v39 = vmul.f32 2.0, %v592_v32 }
  0xf5   : > { %v541_v35 = vpop.f32.mrf.mxu0 }
  0xf6   : > { %v2807_v44 = vsub.f32 %v2716_v34, %v632_v39  ;;  %v615_v47 = vmul.f32 2.0, %v541_v35 }
  0xf8   : > { %v2817_v51 = vsub.f32 %v2716_v34, %v615_v47 }
  0xfa   : > { %693 = vmin.xlane.f32.xlu1 %v2801_v36 }
  0xfb   : > { %v2804_v38 = vpop.f32.mrf.mxu3 }
  0xfd   : > { %v544_v40 = vpop.f32.mrf.mxu0 }
  0xfe   : > { %v616_v41 = vmul.f32 2.0, %v544_v40 }
 0x100   : > { %v2810_v45 = vsub.f32 %v2716_v34, %v616_v41 }
 0x102   : > { %729 = vmin.xlane.f32.xlu1 %v2807_v44  ;;  %697 = vmin.xlane.f32.xlu2 %v2810_v45 }
 0x103   : > { %v2814_v46 = vpop.f32.mrf.mxu3 }
 0x105   : > { %v547_v50 = vpop.f32.mrf.mxu0 }
 0x106   : > { %v617_v53 = vmul.f32 2.0, %v547_v50 }
 0x108   : > { %v2825_v63 = vsub.f32 %v2716_v34, %v617_v53 }
 0x10a   : > { %695 = vmin.xlane.f32.xlu1 %v2817_v51 }
 0x10b   : > { %v601_v52 = vpop.f32.mrf.mxu3 }
 0x10c   : > { %v635_v56 = vmul.f32 2.0, %v601_v52 }
 0x10d   : > { %v550_v57 = vpop.f32.mrf.mxu0 }
 0x10e   : > { %v2821_v58 = vsub.f32 %v2716_v34, %v635_v56  ;;  %v618_v61 = vmul.f32 2.0, %v550_v57 }
 0x110   : > { %4201 = vst [vmem:[#allocation9_spill] sm:$0xff] %v2821_v58  ;;  %735 = vmin.xlane.f32.xlu0 %v2821_v58  ;;  %v2831_v1 = vsub.f32 %v2716_v34, %v618_v61 }
 0x112   : > { %699 = vmin.xlane.f32.xlu1 %v2825_v63 }
 0x115   : > { %v674_v2 = vpop.xlane.xlu0 %673  ;;  %v553_v3 = vpop.f32.mrf.mxu0 }
 0x116   : > { %vm737_vm1 = vcmp.le.f32.partialorder %v2719_v37, %v674_v2  ;;  %v619_v4 = vmul.f32 2.0, %v553_v3 }
 0x117   : > { %v2835_v8 = vsel %vm737_vm1, %v2828_v0, 128 }
 0x118   : > { %701 = vmin.xlane.f32.xlu0 %v2831_v1  ;;  %v2839_v9 = vsub.f32 %v2716_v34, %v619_v4  ;;  %v802_v10 = vshra.s32 %v2835_v8, 16 }
 0x11a   : > { %703 = vmin.xlane.f32.xlu2 %v2839_v9  ;;  %v2848_v16 = vcvt.s32.f32 %v802_v10 }
 0x11b   : > { %v710_v11 = vpop.xlane.xlu2 %709 }
 0x11c   : > { %vm755_vm2 = vcmp.le.f32.partialorder %v2724_v42, %v710_v11 }
 0x11d   : > { %v2845_v14 = vsel %vm755_vm2, %v2828_v0, 128  ;;  %v676_v37 = vpop.xlane.xlu0 %675  ;;  %v556_v15 = vpop.f32.mrf.mxu0 }
 0x11e   : > { %vm738_vm3 = vcmp.le.f32.partialorder %v2728_v43, %v676_v37  ;;  %v1054_v17 = vshra.s32 %v2845_v14, 16  ;;  %v620_v42 = vmul.f32 2.0, %v556_v15 }
 0x11f   : > { %v2852_v20 = vsel %vm738_vm3, %v2828_v0, 128 }
 0x120   : > { %805 = vmin.xlane.f32.xlu0 %v2848_v16  ;;  %v2855_v21 = vcvt.s32.f32 %v1054_v17  ;;  %v816_v22 = vshra.s32 %v2852_v20, 16  ;;  %v2863_v26 = vsub.f32 %v2716_v34, %v620_v42 }
 0x122   : > { %1057 = vmin.xlane.f32.xlu1 %v2855_v21  ;;  %v2860_v43 = vcvt.s32.f32 %v816_v22 }
 0x123   : > { %v712_v23 = vpop.xlane.xlu2 %711 }
 0x124   : > { %vm756_vm4 = vcmp.le.f32.partialorder %v2733_v48, %v712_v23 }
 0x125   : > { %v2866_v27 = vsel %vm756_vm4, %v2828_v0, 128  ;;  %v678_v28 = vpop.xlane.xlu1 %677  ;;  %v559_v29 = vpop.f32.mrf.mxu0 }
 0x126   : > { %v621_v32 = vmul.f32 2.0, %v559_v29  ;;  %v1068_v33 = vshra.s32 %v2866_v27, 16  ;;  %vm739_vm5 = vcmp.le.f32.partialorder %v2737_v49, %v678_v28 }
 0x127   : > { %v2883_v47 = vsel %vm739_vm5, %v2828_v0, 128 }
 0x128   : > { %819 = vmin.xlane.f32.xlu0 %v2860_v43  ;;  %v2876_v39 = vcvt.s32.f32 %v1068_v33  ;;  %v2880_v41 = vsub.f32 %v2716_v34, %v621_v32 }
 0x12a   : > { %705 = vmin.xlane.f32.xlu1 %v2863_v26 }
 0x12b   : > { %v714_v35 = vpop.xlane.xlu2 %713 }
 0x12c   : > { %vm757_vm6 = vcmp.le.f32.partialorder %v2741_v54, %v714_v35  ;;  %v830_v54 = vshra.s32 %v2883_v47, 16 }
 0x12d   : > { %v2874_v48 = vsel %vm757_vm6, %v2828_v0, 128  ;;  %v680_v49 = vpop.xlane.xlu1 %679 }
 0x12e   : > { %v1082_v40 = vshra.s32 %v2874_v48, 16  ;;  %vm740_vm7 = vcmp.le.f32.partialorder %v2745_v55, %v680_v49  ;;  %v2896_v56 = vcvt.s32.f32 %v830_v54 }
 0x12f   : > { %v2900_v60 = vsel %vm740_vm7, %v2828_v0, 128 }
 0x130   : > { %1071 = vmin.xlane.f32.xlu0 %v2876_v39  ;;  %v2886_v50 = vcvt.s32.f32 %v1082_v40  ;;  %v844_v55 = vshra.s32 %v2900_v60, 16 }
 0x132   : > { %1085 = vmin.xlane.f32.xlu2 %v2886_v50  ;;  %707 = vmin.xlane.f32.xlu1 %v2880_v41 }
 0x133   : > { %v716_v52 = vpop.xlane.xlu2 %715 }
 0x134   : > { %vm758_vm8 = vcmp.le.f32.partialorder %v2749_v59, %v716_v52  ;;  %v2908_v59 = vcvt.s32.f32 %v844_v55 }
 0x135   : > { %v2894_v53 = vsel %vm758_vm8, %v2828_v0, 128 }
 0x136   : > { %v1096_v57 = vshra.s32 %v2894_v53, 16 }
 0x138   : > { %833 = vmin.xlane.f32.xlu0 %v2896_v56  ;;  %v2903_v61 = vcvt.s32.f32 %v1096_v57 }
 0x13a   : > { %1099 = vmin.xlane.f32.xlu1 %v2903_v61 }
 0x13b   : > { %v682_v2 = vpop.xlane.xlu2 %681 }
 0x13c   : > { %vm741_vm9 = vcmp.le.f32.partialorder %v2753_v62, %v682_v2 }
 0x13d   : > { %v2911_v3 = vsel %vm741_vm9, %v2828_v0, 128 }
 0x13e   : > { %v858_v4 = vshra.s32 %v2911_v3, 16 }
 0x140   : > { %847 = vmin.xlane.f32.xlu0 %v2908_v59  ;;  %v2917_v37 = vcvt.s32.f32 %v858_v4 }
 0x143   : > { %v718_v10 = vpop.xlane.xlu2 %717 }
 0x144   : > { %vm759_vm10 = vcmp.le.f32.partialorder %v2760_v6, %v718_v10 }
 0x145   : > { %v686_v11 = vpop.xlane.xlu1 %685  ;;  %v2920_v15 = vsel %vm759_vm10, %v2828_v0, 128 }
 0x146   : > { %vm743_vm11 = vcmp.le.f32.partialorder %v2765_v7, %v686_v11  ;;  %v1110_v22 = vshra.s32 %v2920_v15, 16 }
 0x147   : > { %v2923_v62 = vsel %vm743_vm11, %v2828_v0, 128 }
 0x148   : > { %861 = vmin.xlane.f32.xlu0 %v2917_v37  ;;  %v886_v17 = vshra.s32 %v2923_v62, 16  ;;  %v2932_v23 = vcvt.s32.f32 %v1110_v22 }
 0x14a   : > { %v2927_v42 = vcvt.s32.f32 %v886_v17 }
 0x14b   : > { %v684_v6 = vpop.xlane.xlu2 %683 }
 0x14c   : > { %vm742_vm12 = vcmp.le.f32.partialorder %v2769_v12, %v684_v6  ;;  %889 = vmin.xlane.f32.xlu1 %v2927_v42 }
 0x14d   : > { %v688_v7 = vpop.xlane.xlu1 %687  ;;  %v2935_v28 = vsel %vm742_vm12, %v2828_v0, 128 }
 0x14e   : > { %v872_v29 = vshra.s32 %v2935_v28, 16  ;;  %vm744_vm13 = vcmp.le.f32.partialorder %v2773_v13, %v688_v7 }
 0x14f   : > { %v2945_v12 = vsel %vm744_vm13, %v2828_v0, 128 }
 0x150   : > { %1113 = vmin.xlane.f32.xlu0 %v2932_v23  ;;  %v2942_v33 = vcvt.s32.f32 %v872_v29  ;;  %v900_v35 = vshra.s32 %v2945_v12, 16 }
 0x152   : > { %v2950_v49 = vcvt.s32.f32 %v900_v35 }
 0x155   : > { %v2940_v32 = vpop.xlane.xlu1 %723 }
 0x158   : > { %875 = vmin.xlane.f32.xlu0 %v2942_v33 }
 0x15d   : > { %v690_v40 = vpop.xlane.xlu1 %689 }
 0x15e   : > { %vm745_vm14 = vcmp.le.f32.partialorder %v2789_v25, %v690_v40 }
 0x15f   : > { %v2953_v54 = vsel %vm745_vm14, %v2828_v0, 128 }
 0x160   : > { %903 = vmin.xlane.f32.xlu0 %v2950_v49  ;;  %v914_v13 = vshra.s32 %v2953_v54, 16 }
 0x162   : > { %v2957_v52 = vcvt.s32.f32 %v914_v13 }
 0x164   : > { %917 = vmin.xlane.f32.xlu2 %v2957_v52 }
 0x165   : > { %v692_v57 = vpop.xlane.xlu1 %691 }
 0x166   : > { %vm746_vm15 = vcmp.le.f32.partialorder %v2797_v31, %v692_v57  ;;  %v720_v31 = vpop.xlane.xlu0 %719  ;;  %v801_v57 = vand.u32 65535, %v2835_v8 }
 0x167   : > { %v2962_v55 = vsel %vm746_vm15, %v2828_v0, 128  ;;  %vm760_vm6 = vcmp.le.f32.partialorder %v2757_v5, %v720_v31 }
 0x168   : > { %v928_v25 = vshra.s32 %v2962_v55, 16 }
 0x16a   : > { %v2965_v2 = vcvt.s32.f32 %v928_v25  ;;  %v722_v25 = vpop.xlane.xlu2 %721 }
 0x16b   : > { %vm761_vm9 = vcmp.le.f32.partialorder %v2777_v18, %v722_v25 }
 0x16c   : > { %931 = vmin.xlane.f32.xlu1 %v2965_v2 }
 0x16d   : > { %v694_v4 = vpop.xlane.xlu1 %693 }
 0x16e   : > { %vm747_vm1 = vcmp.le.f32.partialorder %v2801_v36, %v694_v4  ;;  %v2978_v6 = vpop.xlane.xlu0 %725 }
 0x16f   : > { %v2970_v10 = vsel %vm747_vm1, %v2828_v0, 128 }
 0x170   : > { %v942_v11 = vshra.s32 %v2970_v10, 16 }
 0x172   : > { %v2973_v17 = vcvt.s32.f32 %v942_v11  ;;  %v803_v11 = vcvt.s32.f32 %v801_v57  ;;  %v634_v57 = vmul.f32 2.0, %v2814_v46 }
 0x174   : > { %4202 = vst [vmem:[#allocation10_spill] sm:$0xff] %v2973_v17  ;;  %945 = vmin.xlane.f32.xlu0 %v2973_v17 }
 0x175   : > { %v2976_v22 = vpop.xlane.xlu1 %729 }
 0x17d   : > { %v696_v7 = vpop.xlane.xlu1 %695 }
 0x17e   : > { %vm748_vm2 = vcmp.le.f32.partialorder %v2817_v51, %v696_v7  ;;  %v815_v7 = vand.u32 65535, %v2852_v20  ;;  %v3007_v20 = vsub.f32 %v2716_v34, %v634_v57 }
 0x17f   : > { %v2982_v29 = vsel %vm748_vm2, %v2828_v0, 128  ;;  %vm762_vm2 = vcmp.le.f32.partialorder %v2781_v19, %v2940_v32  ;;  %v885_v19 = vand.u32 65535, %v2923_v62  ;;  %v899_v62 = vand.u32 65535, %v2945_v12 }
 0x180   : > { %4203 = vst [vmem:[#allocation11_spill] sm:$0xff] %v2982_v29  ;;  %v956_v36 = vshra.s32 %v2982_v29, 16  ;;  %v817_v17 = vcvt.s32.f32 %v815_v7  ;;  %v3025_v7 = vsel %vm760_vm6, %v2828_v0, 128 }
 0x181   : > { %v1124_v57 = vshra.s32 %v3025_v7, 16 }
 0x182   : > { %v2985_v35 = vcvt.s32.f32 %v956_v36  ;;  %v2996_v36 = vpop.xlane.xlu2 %727 }
 0x183   : > { %v2987_v40 = vpop.xlane.xlu0 %735  ;;  %vm764_vm6 = vcmp.le.f32.partialorder %v2793_v30, %v2996_v36 }
 0x184   : > { %4204 = vst [vmem:[#allocation12_spill] sm:$0xff] %v2985_v35  ;;  %959 = vmin.xlane.f32.xlu2 %v2985_v35 }
 0x185   : > { %v700_v58 = vpop.xlane.xlu1 %699 }
 0x186   : > { %vm750_vm13 = vcmp.le.f32.partialorder %v2825_v63, %v700_v58  ;;  %v1081_v58 = vand.u32 65535, %v2874_v48  ;;  %v871_v63 = vand.u32 65535, %v2935_v28 }
 0x188   : > { %v873_v48 = vcvt.s32.f32 %v871_v63  ;;  %v913_v63 = vand.u32 65535, %v2953_v54  ;;  %v901_v54 = vcvt.s32.f32 %v899_v62 }
 0x18a   : > { %v698_v35 = vpop.xlane.xlu2 %697  ;;  %v915_v12 = vcvt.s32.f32 %v913_v63 }
 0x18b   : > { %v702_v13 = vpop.xlane.xlu0 %701  ;;  %vm749_vm5 = vcmp.le.f32.partialorder %v2810_v45, %v698_v35 }
 0x18c   : > { %vm751_vm10 = vcmp.le.f32.partialorder %v2831_v1, %v702_v13 }
 0x18d   : > { %v3057_v18 = vsel %vm751_vm10, %v2828_v0, 128 }
 0x18e   : > { %v998_v25 = vshra.s32 %v3057_v18, 16 }
 0x192   : > { %v704_v13 = vpop.xlane.xlu2 %703 }
 0x193   : > { %v2991_v4 = vpop.xlane.xlu0 %805  ;;  %vm752_vm15 = vcmp.le.f32.partialorder %v2839_v9, %v704_v13  ;;  %v3101_v9 = vsel %vm762_vm2, %v2828_v0, 128  ;;  %v887_v13 = vcvt.s32.f32 %v885_v19 }
 0x194   : > { %vm807_vm3 = vcmp.eq.f32.partialorder %v2848_v16, %v2991_v4  ;;  %v3096_v28 = vsel %vm752_vm15, %v2828_v0, 128 }
 0x195   : > { %v808_v51 = vsel %vm807_vm3, %v803_v11, inf  ;;  %v3010_v11 = vsel %vm749_vm5, %v2828_v0, 128  ;;  %v1012_v32 = vshra.s32 %v3096_v28, 16  ;;  %vm763_vm5 = vcmp.le.f32.partialorder %v2785_v24, %v2978_v6 }
 0x196   : > { %809 = vmin.xlane.f32.xlu2 %v808_v51  ;;  %v3015_v51 = vpop.xlane.xlu1 %1057  ;;  %v3138_v24 = vsel %vm764_vm6, %v2828_v0, 128 }
 0x197   : > { %vm1059_vm14 = vcmp.eq.f32.partialorder %v2855_v21, %v3015_v51 }
 0x19b   : > { %v2998_v29 = vpop.xlane.xlu0 %819 }
 0x19c   : > { %vm821_vm4 = vcmp.eq.f32.partialorder %v2860_v43, %v2998_v29  ;;  %v829_v43 = vand.u32 65535, %v2883_v47  ;;  %v843_v47 = vand.u32 65535, %v2900_v60  ;;  %v857_v60 = vand.u32 65535, %v2911_v3 }
 0x19d   : > { %v822_v8 = vsel %vm821_vm4, %v817_v17, inf  ;;  %v970_v17 = vshra.s32 %v3010_v11, 16  ;;  %v3054_v3 = vsel %vm761_vm9, %v2828_v0, 128 }
 0x19e   : > { %823 = vmin.xlane.f32.xlu0 %v822_v8  ;;  %v831_v45 = vcvt.s32.f32 %v829_v43  ;;  %v3030_v5 = vpop.xlane.xlu1 %705  ;;  %v845_v43 = vcvt.s32.f32 %v843_v47 }
 0x19f   : > { %v3020_v35 = vcvt.s32.f32 %v970_v17  ;;  %v3034_v17 = vcvt.s32.f32 %v1124_v57 }
 0x1a3   : > { %v3004_v16 = vpop.xlane.xlu0 %1071 }
 0x1a4   : > { %vm1073_vm11 = vcmp.eq.f32.partialorder %v2876_v39, %v3004_v16 }
 0x1a6   : > { %733 = vmin.xlane.f32.xlu0 %v3007_v20 }
 0x1ab   : > { %v3018_v46 = vpop.xlane.xlu0 %833 }
 0x1ac   : > { %vm835_vm7 = vcmp.eq.f32.partialorder %v2896_v56, %v3018_v46 }
 0x1ad   : > { %v836_v8 = vsel %vm835_vm7, %v831_v45, inf  ;;  %v1067_v45 = vand.u32 65535, %v2866_v27 }
 0x1ae   : > { %973 = vmin.xlane.f32.xlu0 %v3020_v35  ;;  %837 = vmin.xlane.f32.xlu2 %v836_v8  ;;  %v633_v8 = vmul.f32 2.0, %v2804_v38  ;;  %v3059_v38 = vpop.xlane.xlu1 %707 }
 0x1af   : > { %v1069_v57 = vcvt.s32.f32 %v1067_v45  ;;  %v3072_v45 = vcvt.s32.f32 %v998_v25  ;;  %vm754_vm10 = vcmp.le.f32.partialorder %v2880_v41, %v3059_v38 }
 0x1b0   : > { %v3051_v27 = vsub.f32 %v2716_v34, %v633_v8  ;;  %v1138_v34 = vshra.s32 %v3054_v3, 16  ;;  %v3075_v8 = vsel %vm750_vm13, %v2828_v0, 128 }
 0x1b1   : > { %v1074_v39 = vsel %vm1073_vm11, %v1069_v57, inf  ;;  %v984_v57 = vshra.s32 %v3075_v8, 16  ;;  %vm753_vm11 = vcmp.le.f32.partialorder %v2863_v26, %v3030_v5  ;;  %v1109_v26 = vand.u32 65535, %v2920_v15 }
 0x1b2   : > { %v941_v15 = vand.u32 65535, %v2970_v10 }
 0x1b3   : > { %v3032_v31 = vpop.xlane.xlu0 %847  ;;  %v3098_v25 = vcvt.s32.f32 %v984_v57  ;;  %v1111_v38 = vcvt.s32.f32 %v1109_v26 }
 0x1b4   : > { %vm849_vm8 = vcmp.eq.f32.partialorder %v2908_v59, %v3032_v31  ;;  %v859_v59 = vcvt.s32.f32 %v857_v60 }
 0x1b5   : > { %v850_v56 = vsel %vm849_vm8, %v845_v43, inf }
 0x1b6   : > { %1127 = vmin.xlane.f32.xlu2 %v3034_v17  ;;  %851 = vmin.xlane.f32.xlu1 %v850_v56  ;;  %v3070_v56 = vcvt.s32.f32 %v1138_v34  ;;  %v3083_v21 = vpop.xlane.xlu1 %1099 }
 0x1b7   : > { %vm1101_vm9 = vcmp.eq.f32.partialorder %v2903_v61, %v3083_v21  ;;  %v1180_v61 = vshra.s32 %v3138_v24, 16 }
 0x1bb   : > { %v3046_v47 = vpop.xlane.xlu0 %861 }
 0x1bc   : > { %vm863_vm12 = vcmp.eq.f32.partialorder %v2917_v37, %v3046_v47  ;;  %v1053_v37 = vand.u32 65535, %v2845_v14 }
 0x1bd   : > { %v864_v1 = vsel %vm863_vm12, %v859_v59, inf  ;;  %v3081_v59 = vpop.xlane.xlu2 %1085 }
 0x1be   : > { %865 = vmin.xlane.f32.xlu0 %v864_v1  ;;  %1075 = vmin.xlane.f32.xlu2 %v1074_v39  ;;  %v1055_v60 = vcvt.s32.f32 %v1053_v37  ;;  %vm1087_vm1 = vcmp.eq.f32.partialorder %v2886_v50, %v3081_v59  ;;  %v1083_v39 = vcvt.s32.f32 %v1081_v58 }
 0x1bf   : > { %731 = vmin.xlane.f32.xlu1 %v3051_v27  ;;  %v3104_v50 = vpop.xlane.xlu1 %889 }
 0x1c0   : > { %v1060_v14 = vsel %vm1059_vm14, %v1055_v60, inf  ;;  %v1088_v34 = vsel %vm1087_vm1, %v1083_v39, inf  ;;  %vm891_vm4 = vcmp.eq.f32.partialorder %v2927_v42, %v3104_v50  ;;  %v3111_v60 = vcvt.s32.f32 %v1012_v32 }
 0x1c1   : > { %v892_v58 = vsel %vm891_vm4, %v887_v13, inf  ;;  %v1095_v42 = vand.u32 65535, %v2894_v53  ;;  %v3135_v53 = vsel %vm763_vm5, %v2828_v0, 128  ;;  %v3156_v32 = vsel %vm754_vm10, %v2828_v0, 128 }
 0x1c2   : > { %vm765_vm14 = vcmp.le.f32.partialorder %v2807_v44, %v2976_v22  ;;  %v4206_v22 = vld [vmem:[#allocation10_spill] sm:$0xff] }
 0x1c3   : > { %v3066_v43 = vpop.xlane.xlu0 %1113  ;;  %v1097_v39 = vcvt.s32.f32 %v1095_v42  ;;  %v3175_v63 = vsel %vm765_vm14, %v2828_v0, 128 }
 0x1c4   : > { %vm1115_vm13 = vcmp.eq.f32.partialorder %v2932_v23, %v3066_v43  ;;  %v1194_v44 = vshra.s32 %v3175_v63, 16  ;;  %v4205_v23 = vld [vmem:[#allocation9_spill] sm:$0xff] }
 0x1c5   : > { %v1102_v36 = vsel %vm1101_vm9, %v1097_v39, inf  ;;  %vm768_vm15 = vcmp.le.f32.partialorder %v4205_v23, %v2987_v40  ;;  %v943_v39 = vcvt.s32.f32 %v941_v15  ;;  %v4208_v40 = vld [vmem:[#allocation12_spill] sm:$0xff] }
 0x1c6   : > { %1141 = vmin.xlane.f32.xlu0 %v3070_v56  ;;  %1001 = vmin.xlane.f32.xlu2 %v3072_v45  ;;  %v3191_v10 = vcvt.s32.f32 %v1194_v44 }
 0x1c7   : > { %1061 = vmin.xlane.f32.xlu1 %v1060_v14 }
 0x1cb   : > { %v3091_v1 = vpop.xlane.xlu0 %875 }
 0x1cc   : > { %vm877_vm3 = vcmp.eq.f32.partialorder %v2942_v33, %v3091_v1  ;;  %v1152_v33 = vshra.s32 %v3101_v9, 16 }
 0x1cd   : > { %v878_v37 = vsel %vm877_vm3, %v873_v48, inf  ;;  %vm1249_vm3 = vcmask 7168  }
 0x1ce   : > { %879 = vmin.xlane.f32.xlu2 %v878_v37  ;;  %1089 = vmin.xlane.f32.xlu0 %v1088_v34  ;;  %v3113_v14 = vcvt.s32.f32 %v1152_v33  ;;  %v1166_v37 = vshra.s32 %v3135_v53, 16  ;;  %v3151_v34 = vcvt.s32.f32 %v1180_v61  ;;  %v3159_v33 = vsel %vm753_vm11, %v2828_v0, 128 }
 0x1cf   : > { %987 = vmin.xlane.f32.xlu1 %v3098_v25  ;;  %v1026_v5 = vshra.s32 %v3159_v33, 16 }
 0x1d0   : > { %v3153_v19 = vcvt.s32.f32 %v1166_v37 }
 0x1d1   : > { %v3172_v62 = vcvt.s32.f32 %v1026_v5 }
 0x1d3   : > { %v3118_v57 = vpop.xlane.xlu0 %903 }
 0x1d4   : > { %vm905_vm8 = vcmp.eq.f32.partialorder %v2950_v49, %v3118_v57  ;;  %v927_v49 = vand.u32 65535, %v2962_v55 }
 0x1d5   : > { %v906_v30 = vsel %vm905_vm8, %v901_v54, inf }
 0x1d6   : > { %1015 = vmin.xlane.f32.xlu0 %v3111_v60  ;;  %893 = vmin.xlane.f32.xlu2 %v892_v58  ;;  %v929_v55 = vcvt.s32.f32 %v927_v49  ;;  %v1116_v58 = vsel %vm1115_vm13, %v1111_v38, inf }
 0x1d7   : > { %1155 = vmin.xlane.f32.xlu1 %v3113_v14  ;;  %v3121_v48 = vpop.xlane.xlu2 %917 }
 0x1d8   : > { %vm919_vm7 = vcmp.eq.f32.partialorder %v2957_v52, %v3121_v48 }
 0x1d9   : > { %v920_v6 = vsel %vm919_vm7, %v915_v12, inf  ;;  %v4207_v12 = vld [vmem:[#allocation11_spill] sm:$0xff] }
 0x1da   : > { %v955_v54 = vand.u32 65535, %v4207_v12 }
 0x1dc   : > { %v957_v49 = vcvt.s32.f32 %v955_v54 }
 0x1de   : > { %921 = vmin.xlane.f32.xlu0 %v920_v6  ;;  %907 = vmin.xlane.f32.xlu2 %v906_v30  ;;  %v3189_v6 = vsel %vm768_vm15, %v2828_v0, 128 }
 0x1df   : > { %1103 = vmin.xlane.f32.xlu1 %v1102_v36  ;;  %v3141_v52 = vpop.xlane.xlu1 %931  ;;  %v1236_v61 = vshra.s32 %v3189_v6, 16 }
 0x1e0   : > { %vm933_vm12 = vcmp.eq.f32.partialorder %v2965_v2, %v3141_v52  ;;  %v1040_v2 = vshra.s32 %v3156_v32, 16 }
 0x1e1   : > { %v934_v41 = vsel %vm933_vm12, %v929_v55, inf  ;;  %v3199_v55 = vcvt.s32.f32 %v1236_v61 }
 0x1e2   : > { %v3170_v13 = vcvt.s32.f32 %v1040_v2 }
 0x1e6   : > { %1183 = vmin.xlane.f32.xlu0 %v3151_v34  ;;  %1169 = vmin.xlane.f32.xlu2 %v3153_v19 }
 0x1e7   : > { %935 = vmin.xlane.f32.xlu1 %v934_v41  ;;  %v3179_v42 = vpop.xlane.xlu0 %945  ;;  %v812_v41 = vcvt.f32.s32 %v2991_v4  ;;  %v2499_v4 = vmov 1.0  }
 0x1e8   : > { %vm947_vm1 = vcmp.eq.f32.partialorder %v4206_v22, %v3179_v42 }
 0x1e9   : > { %v948_v30 = vsel %vm947_vm1, %v943_v39, inf  ;;  %v813_v2 = vshll.u32 %v812_v41, 16  ;;  %v969_v39 = vand.u32 65535, %v3010_v11  ;;  %v1123_v11 = vand.u32 65535, %v3025_v7 }
 0x1ee   : > { %1043 = vmin.xlane.f32.xlu0 %v3170_v13  ;;  %1117 = vmin.xlane.f32.xlu2 %v1116_v58  ;;  %v826_v58 = vcvt.f32.s32 %v2998_v29 }
 0x1ef   : > { %1029 = vmin.xlane.f32.xlu1 %v3172_v62 }
 0x1f0   : > { %v827_v44 = vshll.u32 %v826_v58, 16  ;;  %v1125_v58 = vcvt.s32.f32 %v1123_v11 }
 0x1f6   : > { %949 = vmin.xlane.f32.xlu2 %v948_v30  ;;  %v840_v30 = vcvt.f32.s32 %v3018_v46  ;;  %v854_v46 = vcvt.f32.s32 %v3032_v31 }
 0x1f7   : > { %1197 = vmin.xlane.f32.xlu1 %v3191_v10  ;;  %v3194_v36 = vpop.xlane.xlu2 %959 }
 0x1f8   : > { %vm961_vm2 = vcmp.eq.f32.partialorder %v4208_v40, %v3194_v36  ;;  %v841_v41 = vshll.u32 %v840_v30, 16 }
 0x1f9   : > { %v962_v37 = vsel %vm961_vm2, %v957_v49, inf }
 0x1fa   : > { %963 = vmin.xlane.f32.xlu0 %v962_v37  ;;  %v971_v37 = vcvt.s32.f32 %v969_v39 }
 0x1fe   : > { %1239 = vmin.xlane.f32.xlu2 %v3199_v55 }
 0x209   : > { %v810_v26 = vpop.xlane.xlu2 %809 }
 0x20a   : > { %v811_v5 = vcvt.f32.s32 %v810_v26 }
 0x20c   : > { %v3209_v38 = vadd.s32 %v813_v2, %v811_v5 }
 0x20e   : > { %1250 = vst.msk [vmem:[%s3207_s17] sm:$0xff] %vm1249_vm3, %v3209_v38  ;;  %vm4192_vm4 = vcmp.eq.s32.totalorder %v2828_v0, %v3209_v38 }
 0x20f   : > { %2139 = vmatmul.msk.f32.vlgmr.msra.gmra.mxu1 %vm4192_vm4, %v2499_v4 }
 0x211   : > { %v824_v15 = vpop.xlane.xlu0 %823 }
 0x212   : > { %v825_v23 = vcvt.f32.s32 %v824_v15  ;;  %v855_v15 = vshll.u32 %v854_v46, 16  ;;  %v1064_v46 = vcvt.f32.s32 %v3015_v51 }
 0x214   : > { %v3221_v22 = vadd.s32 %v827_v44, %v825_v23  ;;  %v1078_v23 = vcvt.f32.s32 %v3004_v16  ;;  %v1065_v51 = vshll.u32 %v1064_v46, 16 }
 0x216   : > { %1251 = vst.msk [vmem:[%s3207_s17 + $0x8] sm:$0xff] %vm1249_vm3, %v3221_v22  ;;  %vm4193_vm5 = vcmp.eq.s32.totalorder %v2828_v0, %v3221_v22  ;;  %v1079_v39 = vshll.u32 %v1078_v23, 16  ;;  %v983_v23 = vand.u32 65535, %v3075_v8 }
 0x217   : > { %2140 = vmatmul.msk.f32.gmra.mxu1 %vm4193_vm5, %v2499_v4 }
 0x219   : > { %v734_v29 = vpop.xlane.xlu0 %733 }
 0x21a   : > { %vm767_vm6 = vcmp.le.f32.partialorder %v3007_v20, %v734_v29  ;;  %v868_v29 = vcvt.f32.s32 %v3046_v47 }
 0x21b   : > { %v3234_v12 = vsel %vm767_vm6, %v2828_v0, 128 }
 0x21c   : > { %v1222_v54 = vshra.s32 %v3234_v12, 16  ;;  %v869_v30 = vshll.u32 %v868_v29, 16  ;;  %v997_v29 = vand.u32 65535, %v3057_v18 }
 0x21e   : > { %v3239_v49 = vcvt.s32.f32 %v1222_v54  ;;  %v999_v8 = vcvt.s32.f32 %v997_v29 }
 0x220   : > { %1225 = vmin.xlane.f32.xlu2 %v3239_v49 }
 0x221   : > { %v3242_v40 = vpop.xlane.xlu0 %973  ;;  %v838_v61 = vpop.xlane.xlu2 %837 }
 0x222   : > { %v839_v20 = vcvt.f32.s32 %v838_v61  ;;  %vm975_vm7 = vcmp.eq.f32.partialorder %v3020_v35, %v3242_v40 }
 0x223   : > { %v976_v26 = vsel %vm975_vm7, %v971_v37, inf }
 0x224   : > { %v3246_v2 = vadd.s32 %v841_v41, %v839_v20  ;;  %977 = vmin.xlane.f32.xlu0 %v976_v26  ;;  %v1137_v26 = vand.u32 65535, %v3054_v3 }
 0x226   : > { %1252 = vst.msk [vmem:[%s3207_s17 + $0x10] sm:$0xff] %vm1249_vm3, %v3246_v2  ;;  %vm1284_vm8 = vcmp.eq.s32.totalorder %v2828_v0, %v3246_v2 }
 0x227   : > { %2141 = vmatmul.msk.f32.gmra.mxu1 %vm1284_vm8, %v2499_v4 }
 0x229   : > { %v3259_v35 = vpop.xlane.xlu2 %1127  ;;  %v852_v5 = vpop.xlane.xlu1 %851 }
 0x22a   : > { %v853_v7 = vcvt.f32.s32 %v852_v5  ;;  %vm1129_vm9 = vcmp.eq.f32.partialorder %v3034_v17, %v3259_v35 }
 0x22b   : > { %v1130_v31 = vsel %vm1129_vm9, %v1125_v58, inf  ;;  %v1139_v58 = vcvt.s32.f32 %v1137_v26 }
 0x22c   : > { %v3263_v44 = vadd.s32 %v855_v15, %v853_v7  ;;  %1131 = vmin.xlane.f32.xlu1 %v1130_v31 }
 0x22e   : > { %1253 = vst.msk [vmem:[%s3207_s17 + $0x18] sm:$0xff] %vm1249_vm3, %v3263_v44  ;;  %vm1285_vm10 = vcmp.eq.s32.totalorder %v2828_v0, %v3263_v44 }
 0x22f   : > { %2142 = vmatmul.msk.f32.gmra.mxu1 %vm1285_vm10, %v2499_v4 }
 0x231   : > { %v866_v17 = vpop.xlane.xlu0 %865  ;;  %v1076_v54 = vpop.xlane.xlu2 %1075 }
 0x232   : > { %v867_v16 = vcvt.f32.s32 %v866_v17  ;;  %v1077_v61 = vcvt.f32.s32 %v1076_v54  ;;  %v732_v47 = vpop.xlane.xlu1 %731  ;;  %v1092_v54 = vcvt.f32.s32 %v3081_v59  ;;  %v985_v59 = vcvt.s32.f32 %v983_v23 }
 0x233   : > { %vm766_vm11 = vcmp.le.f32.partialorder %v3051_v27, %v732_v47 }
 0x234   : > { %v3277_v37 = vadd.s32 %v869_v30, %v867_v16  ;;  %v3279_v41 = vadd.s32 %v1079_v39, %v1077_v61  ;;  %v3282_v20 = vsel %vm766_vm11, %v2828_v0, 128  ;;  %v882_v39 = vcvt.f32.s32 %v3091_v1 }
 0x235   : > { %v1208_v11 = vshra.s32 %v3282_v20, 16  ;;  %v1093_v1 = vshll.u32 %v1092_v54, 16  ;;  %v1011_v54 = vand.u32 65535, %v3096_v28 }
 0x236   : > { %1254 = vst.msk [vmem:[%s3207_s17 + $0x20] sm:$0xff] %vm1249_vm3, %v3277_v37  ;;  %vm1286_vm12 = vcmp.eq.s32.totalorder %v2828_v0, %v3277_v37  ;;  %v883_v30 = vshll.u32 %v882_v39, 16  ;;  %vm4187_vm6 = vcmp.eq.s32.totalorder %v2828_v0, %v3279_v41  ;;  %v910_v39 = vcvt.f32.s32 %v3118_v57 }
 0x237   : > { %1269 = vst.msk [vmem:[%s3207_s17 + $0x98] sm:$0xff] %vm1249_vm3, %v3279_v41  ;;  %2143 = vmatmul.msk.f32.gmra.mxu1 %vm1286_vm12, %v2499_v4  ;;  %v3299_v27 = vcvt.s32.f32 %v1208_v11  ;;  %v1013_v57 = vcvt.s32.f32 %v1011_v54 }
 0x239   : > { %1211 = vmin.xlane.f32.xlu1 %v3299_v27  ;;  %v3302_v3 = vpop.xlane.xlu0 %1141  ;;  %v3304_v5 = vpop.xlane.xlu2 %1001 }
 0x23a   : > { %v1062_v15 = vpop.xlane.xlu1 %1061  ;;  %vm1143_vm13 = vcmp.eq.f32.partialorder %v3070_v56, %v3302_v3  ;;  %vm1003_vm15 = vcmp.eq.f32.partialorder %v3072_v45, %v3304_v5 }
 0x23b   : > { %v1063_v7 = vcvt.f32.s32 %v1062_v15  ;;  %v1144_v31 = vsel %vm1143_vm13, %v1139_v58, inf  ;;  %v1004_v26 = vsel %vm1003_vm15, %v999_v8, inf  ;;  %v1151_v58 = vand.u32 65535, %v3101_v9 }
 0x23c   : > { %1145 = vmin.xlane.f32.xlu2 %v1144_v31  ;;  %v896_v15 = vcvt.f32.s32 %v3104_v50 }
 0x23d   : > { %v3310_v17 = vadd.s32 %v1065_v51, %v1063_v7  ;;  %v1153_v31 = vcvt.s32.f32 %v1151_v58  ;;  %v1165_v58 = vand.u32 65535, %v3135_v53 }
 0x23e   : > { %v897_v50 = vshll.u32 %v896_v15, 16  ;;  %v1179_v15 = vand.u32 65535, %v3138_v24 }
 0x23f   : > { %1268 = vst.msk [vmem:[%s3207_s17 + $0x90] sm:$0xff] %vm1249_vm3, %v3310_v17  ;;  %vm4189_vm14 = vcmp.eq.s32.totalorder %v2828_v0, %v3310_v17 }
 0x240   : > { %2157 = vmatmul.msk.f32.vlgmr.msra.gmra.mxu2 %vm4189_vm14, %v2499_v4 }
 0x241   : > { %v1090_v18 = vpop.xlane.xlu0 %1089  ;;  %v880_v56 = vpop.xlane.xlu2 %879 }
 0x242   : > { %v1091_v16 = vcvt.f32.s32 %v1090_v18  ;;  %v881_v61 = vcvt.f32.s32 %v880_v56  ;;  %v3325_v47 = vpop.xlane.xlu1 %987  ;;  %v924_v18 = vcvt.f32.s32 %v3121_v48  ;;  %v1106_v56 = vcvt.f32.s32 %v3083_v21 }
 0x243   : > { %vm989_vm1 = vcmp.eq.f32.partialorder %v3098_v25, %v3325_v47  ;;  %v911_v21 = vshll.u32 %v910_v39, 16 }
 0x244   : > { %v3329_v11 = vadd.s32 %v1093_v1, %v1091_v16  ;;  %v3331_v46 = vadd.s32 %v883_v30, %v881_v61  ;;  %1005 = vmin.xlane.f32.xlu2 %v1004_v26  ;;  %v990_v45 = vsel %vm989_vm1, %v985_v59, inf  ;;  %v925_v48 = vshll.u32 %v924_v18, 16 }
 0x245   : > { %991 = vmin.xlane.f32.xlu0 %v990_v45  ;;  %v1107_v30 = vshll.u32 %v1106_v56, 16  ;;  %v1025_v56 = vand.u32 65535, %v3159_v33 }
 0x246   : > { %1270 = vst.msk [vmem:[%s3207_s17 + $0xa0] sm:$0xff] %vm1249_vm3, %v3329_v11  ;;  %vm1287_vm2 = vcmp.eq.s32.totalorder %v2828_v0, %v3331_v46  ;;  %vm4186_vm11 = vcmp.eq.s32.totalorder %v2828_v0, %v3329_v11 }
 0x247   : > { %1255 = vst.msk [vmem:[%s3207_s17 + $0x28] sm:$0xff] %vm1249_vm3, %v3331_v46  ;;  %2144 = vmatmul.msk.f32.gmra.mxu1 %vm1287_vm2, %v2499_v4  ;;  %v1027_v33 = vcvt.s32.f32 %v1025_v56 }
 0x248   : > { %2158 = vmatmul.msk.f32.gmra.mxu2 %vm4187_vm6, %v2499_v4 }
 0x249   : > { %v3353_v25 = vpop.xlane.xlu0 %1015  ;;  %v894_v9 = vpop.xlane.xlu2 %893 }
 0x24a   : > { %v895_v51 = vcvt.f32.s32 %v894_v9  ;;  %v3355_v7 = vpop.xlane.xlu1 %1155  ;;  %vm1017_vm13 = vcmp.eq.f32.partialorder %v3111_v60, %v3353_v25  ;;  %v938_v60 = vcvt.f32.s32 %v3141_v52  ;;  %v1181_v52 = vcvt.s32.f32 %v1179_v15 }
 0x24b   : > { %vm1157_vm7 = vcmp.eq.f32.partialorder %v3113_v14, %v3355_v7  ;;  %v1018_v45 = vsel %vm1017_vm13, %v1013_v57, inf }
 0x24c   : > { %v3359_v23 = vadd.s32 %v897_v50, %v895_v51  ;;  %v1158_v29 = vsel %vm1157_vm7, %v1153_v31, inf  ;;  %v1167_v50 = vcvt.s32.f32 %v1165_v58  ;;  %v939_v31 = vshll.u32 %v938_v60, 16 }
 0x24d   : > { %1159 = vmin.xlane.f32.xlu1 %v1158_v29 }
 0x24e   : > { %1256 = vst.msk [vmem:[%s3207_s17 + $0x30] sm:$0xff] %vm1249_vm3, %v3359_v23  ;;  %vm1288_vm9 = vcmp.eq.s32.totalorder %v2828_v0, %v3359_v23 }
 0x24f   : > { %2145 = vmatmul.msk.f32.gmra.mxu1 %vm1288_vm9, %v2499_v4 }
 0x250   : > { %2159 = vmatmul.msk.f32.gmra.mxu2 %vm4186_vm11, %v2499_v4 }
 0x251   : > { %v922_v28 = vpop.xlane.xlu0 %921  ;;  %v908_v14 = vpop.xlane.xlu2 %907 }
 0x252   : > { %v923_v8 = vcvt.f32.s32 %v922_v28  ;;  %v909_v59 = vcvt.f32.s32 %v908_v14  ;;  %v1104_v1 = vpop.xlane.xlu1 %1103  ;;  %v1120_v28 = vcvt.f32.s32 %v3066_v43 }
 0x253   : > { %v1105_v16 = vcvt.f32.s32 %v1104_v1  ;;  %v952_v1 = vcvt.f32.s32 %v3179_v42  ;;  %v966_v42 = vcvt.f32.s32 %v3194_v36 }
 0x254   : > { %v3382_v61 = vadd.s32 %v925_v48, %v923_v8  ;;  %v3384_v26 = vadd.s32 %v911_v21, %v909_v59  ;;  %v1193_v48 = vand.u32 65535, %v3175_v63  ;;  %v1039_v59 = vand.u32 65535, %v3156_v32 }
 0x255   : > { %v3388_v9 = vadd.s32 %v1107_v30, %v1105_v16  ;;  %1019 = vmin.xlane.f32.xlu1 %v1018_v45  ;;  %v953_v63 = vshll.u32 %v952_v1, 16 }
 0x256   : > { %1258 = vst.msk [vmem:[%s3207_s17 + $0x40] sm:$0xff] %vm1249_vm3, %v3382_v61  ;;  %vm1289_vm15 = vcmp.eq.s32.totalorder %v2828_v0, %v3384_v26  ;;  %v1041_v45 = vcvt.s32.f32 %v1039_v59 }
 0x257   : > { %1257 = vst.msk [vmem:[%s3207_s17 + $0x38] sm:$0xff] %vm1249_vm3, %v3384_v26  ;;  %2146 = vmatmul.msk.f32.gmra.mxu1 %vm1289_vm15, %v2499_v4  ;;  %vm4185_vm1 = vcmp.eq.s32.totalorder %v2828_v0, %v3388_v9 }
 0x258   : > { %1271 = vst.msk [vmem:[%s3207_s17 + $0xa8] sm:$0xff] %vm1249_vm3, %v3388_v9  ;;  %2160 = vmatmul.msk.f32.gmra.mxu2 %vm4185_vm1, %v2499_v4  ;;  %vm1290_vm1 = vcmp.eq.s32.totalorder %v2828_v0, %v3382_v61 }
 0x259   : > { %v3412_v53 = vpop.xlane.xlu0 %1183  ;;  %v3414_v24 = vpop.xlane.xlu2 %1169 }
 0x25a   : > { %v936_v51 = vpop.xlane.xlu1 %935  ;;  %vm1185_vm7 = vcmp.eq.f32.partialorder %v3151_v34, %v3412_v53  ;;  %vm1171_vm13 = vcmp.eq.f32.partialorder %v3153_v19, %v3414_v24  ;;  %v1121_v19 = vshll.u32 %v1120_v28, 16 }
 0x25b   : > { %v937_v29 = vcvt.f32.s32 %v936_v51  ;;  %v1186_v54 = vsel %vm1185_vm7, %v1181_v52, inf  ;;  %v1172_v39 = vsel %vm1171_vm13, %v1167_v50, inf  ;;  %v1235_v52 = vand.u32 65535, %v3189_v6 }
 0x25c   : > { %1187 = vmin.xlane.f32.xlu2 %v1186_v54  ;;  %1173 = vmin.xlane.f32.xlu0 %v1172_v39  ;;  %v967_v50 = vshll.u32 %v966_v42, 16  ;;  %v2327_v54 = vld [vmem:[%s2617_s23] sm:$0xff] }
 0x25d   : > { %v3420_v18 = vadd.s32 %v939_v31, %v937_v29  ;;  %v1237_v51 = vcvt.s32.f32 %v1235_v52 }
 0x25f   : > { %1259 = vst.msk [vmem:[%s3207_s17 + $0x48] sm:$0xff] %vm1249_vm3, %v3420_v18  ;;  %2147 = vmatmul.msk.f32.gmra.mxu1 %vm1290_vm1, %v2499_v4  ;;  %vm1291_vm13 = vcmp.eq.s32.totalorder %v2828_v0, %v3420_v18 }
 0x261   : > { %v1118_v34 = vpop.xlane.xlu2 %1117  ;;  %v3440_v8 = vpop.xlane.xlu0 %1043 }
 0x262   : > { %v1119_v14 = vcvt.f32.s32 %v1118_v34  ;;  %v3433_v57 = vpop.xlane.xlu1 %1029  ;;  %v980_v34 = vcvt.f32.s32 %v3242_v40 }
 0x263   : > { %vm1031_vm7 = vcmp.eq.f32.partialorder %v3172_v62, %v3433_v57  ;;  %v1195_v62 = vcvt.s32.f32 %v1193_v48 }
 0x264   : > { %v3437_v43 = vadd.s32 %v1121_v19, %v1119_v14  ;;  %v1032_v21 = vsel %vm1031_vm7, %v1027_v33, inf  ;;  %vm1045_vm7 = vcmp.eq.f32.partialorder %v3170_v13, %v3440_v8  ;;  %v2328_v33 = vld [vmem:[%s2617_s23 + $0x8] sm:$0xff]  ;;  %v981_v1 = vshll.u32 %v980_v34, 16 }
 0x265   : > { %1033 = vmin.xlane.f32.xlu0 %v1032_v21  ;;  %v1046_v15 = vsel %vm1045_vm7, %v1041_v45, inf }
 0x266   : > { %1272 = vst.msk [vmem:[%s3207_s17 + $0xb0] sm:$0xff] %vm1249_vm3, %v3437_v43  ;;  %vm4188_vm11 = vcmp.eq.s32.totalorder %v2828_v0, %v3437_v43 }
 0x267   : > { %2148 = vmatmul.msk.f32.gmra.mxu1 %vm1291_vm13, %v2499_v4  ;;  %2161 = vmatmul.msk.f32.gmra.mxu2 %vm4188_vm11, %v2499_v4 }
 0x269   : > { %v950_v32 = vpop.xlane.xlu2 %949 }
 0x26a   : > { %v951_v30 = vcvt.f32.s32 %v950_v32  ;;  %v3462_v16 = vpop.xlane.xlu1 %1197 }
 0x26b   : > { %vm1199_vm6 = vcmp.eq.f32.partialorder %v3191_v10, %v3462_v16  ;;  %v1204_v18 = vcvt.f32.s32 %v3462_v16 }
 0x26c   : > { %v3466_v58 = vadd.s32 %v953_v63, %v951_v30  ;;  %v1200_v60 = vsel %vm1199_vm6, %v1195_v62, inf }
 0x26d   : > { %1047 = vmin.xlane.f32.xlu0 %v1046_v15  ;;  %1201 = vmin.xlane.f32.xlu1 %v1200_v60  ;;  %v964_v13 = vpop.xlane.xlu0 %963  ;;  %v2500_v60 = vmov 0.0  }
 0x26e   : > { %1260 = vst.msk [vmem:[%s3207_s17 + $0x50] sm:$0xff] %vm1249_vm3, %v3466_v58  ;;  %v965_v36 = vcvt.f32.s32 %v964_v13  ;;  %vm1292_vm11 = vcmp.eq.s32.totalorder %v2828_v0, %v3466_v58  ;;  %v2107_v13 = vsel %vm4192_vm4, 1.0, %v2500_v60  ;;  %v2111_v34 = vsel %vm1286_vm12, 1.0, %v2500_v60 }
 0x26f   : > { %2149 = vmatmul.msk.f32.gmra.mxu1 %vm1292_vm11, %v2499_v4  ;;  %354 = vst [vmem:[%s3614_s22] sm:$0x1] %v2500_v60 }
 0x270   : > { %v3478_v10 = vadd.s32 %v967_v50, %v965_v36  ;;  %v2109_v50 = vsel %vm1284_vm8, 1.0, %v2500_v60 }
 0x271   : > { %v3480_v6 = vpop.xlane.xlu2 %1239 }
 0x272   : > { %1261 = vst.msk [vmem:[%s3207_s17 + $0x58] sm:$0xff] %vm1249_vm3, %v3478_v10  ;;  %vm1241_vm6 = vcmp.eq.f32.partialorder %v3199_v55, %v3480_v6  ;;  %vm1293_vm7 = vcmp.eq.s32.totalorder %v2828_v0, %v3478_v10  ;;  %v1221_v55 = vand.u32 65535, %v3234_v12  ;;  %v1246_v23 = vcvt.f32.s32 %v3480_v6 }
 0x273   : > { %v1242_v31 = vsel %vm1241_vm6, %v1237_v51, inf }
 0x274   : > { %1243 = vmin.xlane.f32.xlu2 %v1242_v31  ;;  %v1223_v28 = vcvt.s32.f32 %v1221_v55  ;;  %v2329_v31 = vld [vmem:[%s2617_s23 + $0x10] sm:$0xff]  ;;  %v2110_v55 = vsel %vm1285_vm10, 1.0, %v2500_v60  ;;  %v1247_v6 = vshll.u32 %v1246_v23, 16 }
 0x277   : > { %2150 = vmatmul.msk.f32.gmra.mxu1 %vm1293_vm7, %v2499_v4 }
 0x28c   : > { %v1395_v29 = vpop.f32.mrf.mxu1 }
 0x28d   : > { %1491 = vst.msk [vmem:[%s3497_s21] sm:$0xff] %vm394_vm0, %v1395_v29  ;;  %v1523_v39 = vsub.f32 %v1395_v29, %v2327_v54 }
 0x28f   : > { %v1556_v14 = vmul.f32 %v1523_v39, %v1523_v39 }
 0x291   : > { %v1588_v62 = vsel %vm394_vm0, %v1556_v14, 0.0 }
 0x293   : > { %v3503_v56 = vpop.xlane.xlu2 %1225 }
 0x294   : > { %v1398_v19 = vpop.f32.mrf.mxu1  ;;  %vm1227_vm6 = vcmp.eq.f32.partialorder %v3239_v49, %v3503_v56  ;;  %v1134_v49 = vcvt.f32.s32 %v3259_v35  ;;  %v2108_v35 = vsel %vm4193_vm5, 1.0, %v2500_v60 }
 0x295   : > { %1492 = vst.msk [vmem:[%s3497_s21 + $0x8] sm:$0xff] %vm394_vm0, %v1398_v19  ;;  %v1524_v21 = vsub.f32 %v1398_v19, %v2328_v33  ;;  %v1228_v48 = vsel %vm1227_vm6, %v1223_v28, inf  ;;  %v1661_v51 = vadd.f32 %v2108_v35, %v2107_v13  ;;  %v1207_v28 = vand.u32 65535, %v3282_v20 }
 0x296   : > { %1229 = vmin.xlane.f32.xlu1 %v1228_v48  ;;  %v1135_v45 = vshll.u32 %v1134_v49, 16  ;;  %v2112_v33 = vsel %vm1287_vm2, 1.0, %v2500_v60  ;;  %v2113_v20 = vsel %vm1288_vm9, 1.0, %v2500_v60 }
 0x297   : > { %v1557_v12 = vmul.f32 %v1524_v21, %v1524_v21  ;;  %v978_v59 = vpop.xlane.xlu0 %977  ;;  %v1662_v54 = vadd.f32 %v2109_v50, %v1661_v51 }
 0x298   : > { %v979_v32 = vcvt.f32.s32 %v978_v59 }
 0x299   : > { %v1589_v40 = vsel %vm394_vm0, %v1557_v12, 0.0  ;;  %v1663_v19 = vadd.f32 %v2110_v55, %v1662_v54  ;;  %v1148_v12 = vcvt.f32.s32 %v3302_v3  ;;  %v2114_v3 = vsel %vm1289_vm15, 1.0, %v2500_v60 }
 0x29a   : > { %v1590_v63 = vadd.f32 %v1589_v40, %v1588_v62  ;;  %v3513_v42 = vadd.s32 %v981_v1, %v979_v32  ;;  %v1209_v32 = vcvt.s32.f32 %v1207_v28  ;;  %v2330_v40 = vld [vmem:[%s2617_s23 + $0x18] sm:$0xff]  ;;  %v2116_v55 = vsel %vm1291_vm13, 1.0, %v2500_v60  ;;  %v2331_v28 = vld [vmem:[%s2617_s23 + $0x20] sm:$0xff] }
 0x29b   : > { %v1664_v48 = vadd.f32 %v2111_v34, %v1663_v19  ;;  %v1149_v35 = vshll.u32 %v1148_v12, 16  ;;  %v2117_v19 = vsel %vm1292_vm11, 1.0, %v2500_v60 }
 0x29c   : > { %1262 = vst.msk [vmem:[%s3207_s17 + $0x60] sm:$0xff] %vm1249_vm3, %v3513_v42  ;;  %vm1294_vm6 = vcmp.eq.s32.totalorder %v2828_v0, %v3513_v42 }
 0x29d   : > { %2151 = vmatmul.msk.f32.gmra.mxu1 %vm1294_vm6, %v2499_v4  ;;  %v1665_v62 = vadd.f32 %v2112_v33, %v1664_v48  ;;  %v2118_v48 = vsel %vm1293_vm7, 1.0, %v2500_v60 }
 0x29f   : > { %v1132_v30 = vpop.xlane.xlu1 %1131 }
 0x2a0   : > { %v1133_v15 = vcvt.f32.s32 %v1132_v30  ;;  %v1666_v30 = vadd.f32 %v2113_v20, %v1665_v62 }
 0x2a2   : > { %v3529_v52 = vadd.s32 %v1135_v45, %v1133_v15  ;;  %v1667_v50 = vadd.f32 %v2114_v3, %v1666_v30 }
 0x2a4   : > { %1273 = vst.msk [vmem:[%s3207_s17 + $0xb8] sm:$0xff] %vm1249_vm3, %v3529_v52  ;;  %v1401_v36 = vpop.f32.mrf.mxu1  ;;  %vm4190_vm14 = vcmp.eq.s32.totalorder %v2828_v0, %v3529_v52 }
 0x2a5   : > { %1493 = vst.msk [vmem:[%s3497_s21 + $0x10] sm:$0xff] %vm394_vm0, %v1401_v36  ;;  %v1525_v29 = vsub.f32 %v1401_v36, %v2329_v31  ;;  %2162 = vmatmul.msk.f32.gmra.mxu2 %vm4190_vm14, %v2499_v4  ;;  %v1008_v31 = vcvt.f32.s32 %v3304_v5 }
 0x2a7   : > { %v1558_v39 = vmul.f32 %v1525_v29, %v1525_v29  ;;  %v2115_v29 = vsel %vm1290_vm1, 1.0, %v2500_v60 }
 0x2a8   : > { %v1668_v5 = vadd.f32 %v2115_v29, %v1667_v50 }
 0x2a9   : > { %v1591_v14 = vsel %vm394_vm0, %v1558_v39, 0.0  ;;  %v994_v39 = vcvt.f32.s32 %v3325_v47 }
 0x2aa   : > { %v1592_v21 = vadd.f32 %v1591_v14, %v1590_v63  ;;  %v1669_v47 = vadd.f32 %v2116_v55, %v1668_v5  ;;  %v1022_v5 = vcvt.f32.s32 %v3353_v25 }
 0x2ac   : > { %v3570_v59 = vpop.xlane.xlu1 %1211  ;;  %v1404_v1 = vpop.f32.mrf.mxu1 }
 0x2ad   : > { %1494 = vst.msk [vmem:[%s3497_s21 + $0x18] sm:$0xff] %vm394_vm0, %v1404_v1  ;;  %v1526_v49 = vsub.f32 %v1404_v1, %v2330_v40  ;;  %vm1213_vm14 = vcmp.eq.f32.partialorder %v3299_v27, %v3570_v59  ;;  %v995_v1 = vshll.u32 %v994_v39, 16 }
 0x2ae   : > { %v1214_v63 = vsel %vm1213_vm14, %v1209_v32, inf  ;;  %v1670_v32 = vadd.f32 %v2117_v19, %v1669_v47  ;;  %v1023_v47 = vshll.u32 %v1022_v5, 16 }
 0x2af   : > { %v1559_v45 = vmul.f32 %v1526_v49, %v1526_v49  ;;  %1215 = vmin.xlane.f32.xlu2 %v1214_v63  ;;  %v1146_v15 = vpop.xlane.xlu2 %1145  ;;  %v2119_v49 = vsel %vm1294_vm6, 1.0, %v2500_v60 }
 0x2b0   : > { %v1147_v13 = vcvt.f32.s32 %v1146_v15  ;;  %v1671_v30 = vadd.f32 %v2118_v48, %v1670_v32  ;;  %v1162_v15 = vcvt.f32.s32 %v3355_v7 }
 0x2b1   : > { %v1593_v36 = vsel %vm394_vm0, %v1559_v45, 0.0 }
 0x2b2   : > { %v1594_v51 = vadd.f32 %v1593_v36, %v1592_v21  ;;  %v3582_v27 = vadd.s32 %v1149_v35, %v1147_v13  ;;  %v1009_v21 = vshll.u32 %v1008_v31, 16  ;;  %v1672_v35 = vadd.f32 %v2119_v49, %v1671_v30 }
 0x2b4   : > { %1274 = vst.msk [vmem:[%s3207_s17 + $0xc0] sm:$0xff] %vm1249_vm3, %v3582_v27  ;;  %v1407_v54 = vpop.f32.mrf.mxu1  ;;  %vm4191_vm14 = vcmp.eq.s32.totalorder %v2828_v0, %v3582_v27 }
 0x2b5   : > { %1495 = vst.msk [vmem:[%s3497_s21 + $0x20] sm:$0xff] %vm394_vm0, %v1407_v54  ;;  %v1527_v34 = vsub.f32 %v1407_v54, %v2331_v28  ;;  %2163 = vmatmul.msk.f32.gmra.mxu2 %vm4191_vm14, %v2499_v4  ;;  %v2332_v28 = vld [vmem:[%s2617_s23 + $0x28] sm:$0xff] }
 0x2b7   : > { %v1560_v14 = vmul.f32 %v1527_v34, %v1527_v34  ;;  %v1006_v33 = vpop.xlane.xlu2 %1005 }
 0x2b8   : > { %v1007_v12 = vcvt.f32.s32 %v1006_v33  ;;  %v992_v20 = vpop.xlane.xlu0 %991 }
 0x2b9   : > { %v1595_v62 = vsel %vm394_vm0, %v1560_v14, 0.0  ;;  %v993_v40 = vcvt.f32.s32 %v992_v20  ;;  %v1190_v20 = vcvt.f32.s32 %v3412_v53 }
 0x2ba   : > { %v1596_v3 = vadd.f32 %v1595_v62, %v1594_v51  ;;  %v1010_v63 = vadd.s32 %v1009_v21, %v1007_v12  ;;  %v1163_v51 = vshll.u32 %v1162_v15, 16  ;;  %v2333_v62 = vld [vmem:[%s2617_s23 + $0x30] sm:$0xff] }
 0x2bb   : > { %v996_v45 = vadd.s32 %v995_v1, %v993_v40  ;;  %v1176_v1 = vcvt.f32.s32 %v3414_v24  ;;  %v1191_v15 = vshll.u32 %v1190_v20, 16  ;;  %v1205_v20 = vshll.u32 %v1204_v18, 16 }
 0x2bc   : > { %1264 = vst.msk [vmem:[%s3207_s17 + $0x70] sm:$0xff] %vm1249_vm3, %v1010_v63  ;;  %vm1296_vm4 = vcmp.eq.s32.totalorder %v2828_v0, %v1010_v63 }
 0x2bd   : > { %1263 = vst.msk [vmem:[%s3207_s17 + $0x68] sm:$0xff] %vm1249_vm3, %v996_v45  ;;  %vm1295_vm14 = vcmp.eq.s32.totalorder %v2828_v0, %v996_v45  ;;  %v2121_v36 = vsel %vm1296_vm4, 1.0, %v2500_v60  ;;  %v2334_v45 = vld [vmem:[%s2617_s23 + $0x38] sm:$0xff] }
 0x2be   : > { %v2120_v13 = vsel %vm1295_vm14, 1.0, %v2500_v60  ;;  %2152 = vmatmul.msk.f32.gmra.mxu1 %vm1295_vm14, %v2499_v4 }
 0x2bf   : > { %v1673_v50 = vadd.f32 %v2120_v13, %v1672_v35  ;;  %v1177_v35 = vshll.u32 %v1176_v1, 16 }
 0x2c0   : > { %v1160_v7 = vpop.xlane.xlu1 %1159 }
 0x2c1   : > { %v1161_v31 = vcvt.f32.s32 %v1160_v7  ;;  %v1674_v29 = vadd.f32 %v2121_v36, %v1673_v50 }
 0x2c3   : > { %v3643_v55 = vadd.s32 %v1163_v51, %v1161_v31  ;;  %v3645_v54 = vpop.f32.mrf.mxu2 }
 0x2c4   : > { %1509 = vst.msk [vmem:[%s3497_s21 + $0x90] sm:$0xff] %vm394_vm0, %v3645_v54  ;;  %v1410_v39 = vpop.f32.mrf.mxu1 }
 0x2c5   : > { %1275 = vst.msk [vmem:[%s3207_s17 + $0xc8] sm:$0xff] %vm1249_vm3, %v3643_v55  ;;  %v1528_v34 = vsub.f32 %v1410_v39, %v2332_v28  ;;  %vm4194_vm5 = vcmp.eq.s32.totalorder %v2828_v0, %v3643_v55 }
 0x2c6   : > { %1496 = vst.msk [vmem:[%s3497_s21 + $0x28] sm:$0xff] %vm394_vm0, %v1410_v39  ;;  %2153 = vmatmul.msk.f32.gmra.mxu1 %vm1296_vm4, %v2499_v4  ;;  %2164 = vmatmul.msk.f32.gmra.mxu2 %vm4194_vm5, %v2499_v4  ;;  %v1036_v39 = vcvt.f32.s32 %v3433_v57 }
 0x2c7   : > { %v1561_v25 = vmul.f32 %v1528_v34, %v1528_v34 }
 0x2c8   : > { %v1020_v19 = vpop.xlane.xlu1 %1019  ;;  %v1037_v28 = vshll.u32 %v1036_v39, 16 }
 0x2c9   : > { %v1597_v14 = vsel %vm394_vm0, %v1561_v25, 0.0  ;;  %v1021_v33 = vcvt.f32.s32 %v1020_v19 }
 0x2ca   : > { %v1598_v21 = vadd.f32 %v1597_v14, %v1596_v3  ;;  %v1050_v14 = vcvt.f32.s32 %v3440_v8 }
 0x2cb   : > { %v1024_v48 = vadd.s32 %v1023_v47, %v1021_v33  ;;  %v3667_v12 = vpop.f32.mrf.mxu2  ;;  %v2335_v33 = vld [vmem:[%s2617_s23 + $0x40] sm:$0xff] }
 0x2cc   : > { %1510 = vst.msk [vmem:[%s3497_s21 + $0x98] sm:$0xff] %vm394_vm0, %v3667_v12  ;;  %v1413_v32 = vpop.f32.mrf.mxu1  ;;  %v1051_v8 = vshll.u32 %v1050_v14, 16 }
 0x2cd   : > { %1265 = vst.msk [vmem:[%s3207_s17 + $0x78] sm:$0xff] %vm1249_vm3, %v1024_v48  ;;  %v1529_v40 = vsub.f32 %v1413_v32, %v2333_v62  ;;  %vm1297_vm5 = vcmp.eq.s32.totalorder %v2828_v0, %v1024_v48 }
 0x2ce   : > { %1497 = vst.msk [vmem:[%s3497_s21 + $0x30] sm:$0xff] %vm394_vm0, %v1413_v32  ;;  %v2122_v49 = vsel %vm1297_vm5, 1.0, %v2500_v60  ;;  %2154 = vmatmul.msk.f32.gmra.mxu1 %vm1297_vm5, %v2499_v4  ;;  %2171 = vmatpush.msk.msra.mxu2 %vm1297_vm5, %v2499_v4 }
 0x2cf   : > { %v1562_v53 = vmul.f32 %v1529_v40, %v1529_v40  ;;  %v3683_v24 = vadd.f32 %v2122_v49, %v1674_v29  ;;  %v1188_v3 = vpop.xlane.xlu2 %1187  ;;  %v1174_v30 = vpop.xlane.xlu0 %1173 }
 0x2d0   : > { %v1189_v13 = vcvt.f32.s32 %v1188_v3  ;;  %v1175_v50 = vcvt.f32.s32 %v1174_v30  ;;  %2172 = vmatpush.msk.msra.mxu2 %vm1296_vm4, %v2499_v4  ;;  %v2336_v3 = vld [vmem:[%s2617_s23 + $0x48] sm:$0xff] }
 0x2d1   : > { %v1599_v7 = vsel %vm394_vm0, %v1562_v53, 0.0 }
 0x2d2   : > { %v1600_v36 = vadd.f32 %v1599_v7, %v1598_v21  ;;  %v3689_v51 = vadd.s32 %v1191_v15, %v1189_v13  ;;  %v3691_v31 = vadd.s32 %v1177_v35, %v1175_v50  ;;  %2173 = vmatpush.msk.msra.mxu2 %vm1295_vm14, %v2499_v4 }
 0x2d3   : > { %v3696_v29 = vpop.f32.mrf.mxu2 }
 0x2d4   : > { %1277 = vst.msk [vmem:[%s3207_s17 + $0xd8] sm:$0xff] %vm1249_vm3, %v3689_v51  ;;  %2174 = vmatpush.msk.msra.mxu2 %vm1294_vm6, %v2499_v4  ;;  %v1416_v63 = vpop.f32.mrf.mxu1  ;;  %vm1308_vm4 = vcmp.eq.s32.totalorder %v2828_v0, %v3691_v31  ;;  %vm1309_vm5 = vcmp.eq.s32.totalorder %v2828_v0, %v3689_v51  ;;  %vm4215_vm6 = vcmp.eq.s32.totalorder %v2828_v0, %v3437_v43 }
 0x2d5   : > { %1276 = vst.msk [vmem:[%s3207_s17 + $0xd0] sm:$0xff] %vm1249_vm3, %v3691_v31  ;;  %v1530_v5 = vsub.f32 %v1416_v63, %v2334_v45  ;;  %2165 = vmatmul.msk.f32.gmra.mxu2 %vm1308_vm4, %v2499_v4 }
 0x2d6   : > { %1511 = vst.msk [vmem:[%s3497_s21 + $0xa0] sm:$0xff] %vm394_vm0, %v3696_v29  ;;  %2175 = vmatpush.msk.msra.mxu2 %vm1293_vm7, %v2499_v4  ;;  %vm4214_vm7 = vcmp.eq.s32.totalorder %v2828_v0, %v3388_v9  ;;  %v2340_v9 = vld [vmem:[%s2617_s23 + $0x68] sm:$0xff] }
 0x2d7   : > { %1498 = vst.msk [vmem:[%s3497_s21 + $0x38] sm:$0xff] %vm394_vm0, %v1416_v63  ;;  %v1563_v57 = vmul.f32 %v1530_v5, %v1530_v5  ;;  %v2338_v5 = vld [vmem:[%s2617_s23 + $0x58] sm:$0xff] }
 0x2d8   : > { %v1034_v42 = vpop.xlane.xlu0 %1033  ;;  %2176 = vmatpush.msk.msra.mxu2 %vm1292_vm11, %v2499_v4 }
 0x2d9   : > { %v1601_v34 = vsel %vm394_vm0, %v1563_v57, 0.0  ;;  %v1035_v25 = vcvt.f32.s32 %v1034_v42 }
 0x2da   : > { %v1602_v19 = vadd.f32 %v1601_v34, %v1600_v36  ;;  %2177 = vmatpush.msk.msra.mxu2 %vm1291_vm13, %v2499_v4  ;;  %vm4213_vm13 = vcmp.eq.s32.totalorder %v2828_v0, %v3329_v11 }
 0x2db   : > { %v3734_v10 = vadd.s32 %v1037_v28, %v1035_v25  ;;  %v3736_v47 = vpop.f32.mrf.mxu2 }
 0x2dc   : > { %1512 = vst.msk [vmem:[%s3497_s21 + $0xa8] sm:$0xff] %vm394_vm0, %v3736_v47  ;;  %2178 = vmatpush.msk.msra.mxu2 %vm1290_vm1, %v2499_v4  ;;  %v1419_v58 = vpop.f32.mrf.mxu1  ;;  %vm4212_vm1 = vcmp.eq.s32.totalorder %v2828_v0, %v3279_v41 }
 0x2dd   : > { %1266 = vst.msk [vmem:[%s3207_s17 + $0x80] sm:$0xff] %vm1249_vm3, %v3734_v10  ;;  %v1531_v21 = vsub.f32 %v1419_v58, %v2335_v33  ;;  %vm1298_vm11 = vcmp.eq.s32.totalorder %v2828_v0, %v3734_v10  ;;  %2166 = vmatmul.msk.f32.gmra.mxu2 %vm1309_vm5, %v2499_v4  ;;  %v2126_v33 = vsel %vm4212_vm1, 1.0, %v2500_v60 }
 0x2de   : > { %1499 = vst.msk [vmem:[%s3497_s21 + $0x40] sm:$0xff] %vm394_vm0, %v1419_v58  ;;  %2155 = vmatmul.msk.f32.gmra.mxu1 %vm1298_vm11, %v2499_v4  ;;  %2179 = vmatpush.msk.msra.mxu2 %vm1289_vm15, %v2499_v4  ;;  %vm4211_vm15 = vcmp.eq.s32.totalorder %v2828_v0, %v3310_v17 }
 0x2df   : > { %v1564_v61 = vmul.f32 %v1531_v21, %v1531_v21  ;;  %v2125_v58 = vsel %vm4211_vm15, 1.0, %v2500_v60  ;;  %vm4218_vm15 = vcmp.eq.s32.totalorder %v2828_v0, %v3643_v55 }
 0x2e0   : > { %v1048_v16 = vpop.xlane.xlu0 %1047  ;;  %2180 = vmatpush.msk.msra.mxu2 %vm1288_vm9, %v2499_v4  ;;  %v1202_v48 = vpop.xlane.xlu1 %1201 }
 0x2e1   : > { %v1603_v1 = vsel %vm394_vm0, %v1564_v61, 0.0  ;;  %v1049_v32 = vcvt.f32.s32 %v1048_v16  ;;  %v1203_v62 = vcvt.f32.s32 %v1202_v48  ;;  %v1232_v61 = vcvt.f32.s32 %v3503_v56 }
 0x2e2   : > { %v1604_v26 = vadd.f32 %v1603_v1, %v1602_v19  ;;  %2181 = vmatpush.msk.msra.mxu2 %vm1287_vm2, %v2499_v4  ;;  %v2128_v48 = vsel %vm4214_vm7, 1.0, %v2500_v60 }
 0x2e3   : > { %v3778_v40 = vadd.s32 %v1051_v8, %v1049_v32  ;;  %v3780_v49 = vadd.s32 %v1205_v20, %v1203_v62  ;;  %v1233_v20 = vshll.u32 %v1232_v61, 16 }
 0x2e4   : > { %2182 = vmatpush.msk.msra.mxu2 %vm1286_vm12, %v2499_v4  ;;  %v1422_v53 = vpop.f32.mrf.mxu1  ;;  %vm4210_vm12 = vcmp.eq.s32.totalorder %v2828_v0, %v3209_v38  ;;  %v2123_v38 = vsel %vm1298_vm11, 1.0, %v2500_v60 }
 0x2e5   : > { %1267 = vst.msk [vmem:[%s3207_s17 + $0x88] sm:$0xff] %vm1249_vm3, %v3778_v40  ;;  %v1532_v30 = vsub.f32 %v1422_v53, %v2336_v3  ;;  %vm1299_vm2 = vcmp.eq.s32.totalorder %v2828_v0, %v3778_v40  ;;  %vm1310_vm9 = vcmp.eq.s32.totalorder %v2828_v0, %v3780_v49  ;;  %v1676_v34 = vadd.f32 %v2123_v38, %v3683_v24 }
 0x2e6   : > { %1278 = vst.msk [vmem:[%s3207_s17 + $0xe0] sm:$0xff] %vm1249_vm3, %v3780_v49  ;;  %2156 = vmatmul.msk.f32.gmra.mxu1 %vm1299_vm2, %v2499_v4  ;;  %2167 = vmatmul.msk.f32.gmra.mxu2 %vm1310_vm9, %v2499_v4  ;;  %v2124_v28 = vsel %vm1299_vm2, 1.0, %v2500_v60  ;;  %v2127_v24 = vsel %vm4213_vm13, 1.0, %v2500_v60  ;;  %vm4223_vm13 = vmmov %vm4214_vm7  ;;  %vm4224_vm7 = vcmp.eq.s32.totalorder %v2828_v0, %v3329_v11 }
 0x2e7   : > { %1500 = vst.msk [vmem:[%s3497_s21 + $0x48] sm:$0xff] %vm394_vm0, %v1422_v53  ;;  %v1565_v37 = vmul.f32 %v1532_v30, %v1532_v30  ;;  %2183 = vmatpush.msk.msra.mxu2 %vm1285_vm10, %v2499_v4  ;;  %v1244_v46 = vpop.xlane.xlu2 %1243  ;;  %vm4209_vm10 = vcmp.eq.s32.totalorder %v2828_v0, %v3221_v22  ;;  %v2337_v22 = vld [vmem:[%s2617_s23 + $0x50] sm:$0xff]  ;;  %v1677_v14 = vadd.f32 %v2124_v28, %v1676_v34 }
 0x2e8   : > { %v1245_v15 = vcvt.f32.s32 %v1244_v46 }
 0x2e9   : > { %v1605_v35 = vsel %vm394_vm0, %v1565_v37, 0.0  ;;  %2184 = vmatpush.msk.msra.mxu2 %vm1284_vm8, %v2499_v4  ;;  %v1678_v18 = vadd.f32 %v2125_v58, %v1677_v14  ;;  %v2132_v37 = vsel %vm4218_vm15, 1.0, %v2500_v60 }
 0x2ea   : > { %v1606_v13 = vadd.f32 %v1605_v35, %v1604_v26  ;;  %v3817_v50 = vadd.s32 %v1247_v6, %v1245_v15  ;;  %v3819_v7 = vpop.f32.mrf.mxu2  ;;  %v2129_v26 = vsel %vm4215_vm6, 1.0, %v2500_v60  ;;  %v2339_v15 = vld [vmem:[%s2617_s23 + $0x60] sm:$0xff] }
 0x2eb   : > { %2185 = vmatpush.msk.msra.mxu2 %vm4209_vm10, %v2499_v4  ;;  %1513 = vst.msk [vmem:[%s3497_s21 + $0xb0] sm:$0xff] %vm394_vm0, %v3819_v7  ;;  %v1679_v21 = vadd.f32 %v2126_v33, %v1678_v18  ;;  %vm4216_vm10 = vcmp.eq.s32.totalorder %v2828_v0, %v3529_v52 }
 0x2ec   : > { %1281 = vst.msk [vmem:[%s3207_s17 + $0xf8] sm:$0xff] %vm1249_vm3, %v3817_v50  ;;  %v1425_v2 = vpop.f32.mrf.mxu1  ;;  %vm1313_vm8 = vcmp.eq.s32.totalorder %v2828_v0, %v3817_v50  ;;  %v2130_v23 = vsel %vm4216_vm10, 1.0, %v2500_v60 }
 0x2ed   : > { %2186 = vmatpush.msk.msra.mxu2 %vm4210_vm12, %v2499_v4  ;;  %1501 = vst.msk [vmem:[%s3497_s21 + $0x50] sm:$0xff] %vm394_vm0, %v1425_v2  ;;  %v1533_v44 = vsub.f32 %v1425_v2, %v2337_v22  ;;  %2187 = vmatpush.msk.msra.mxu3 %vm1313_vm8, %v2499_v4  ;;  %v1680_v8 = vadd.f32 %v2127_v24, %v1679_v21  ;;  %v2133_v2 = vsel %vm1308_vm4, 1.0, %v2500_v60  ;;  %v1218_v22 = vcvt.f32.s32 %v3570_v59 }
 0x2ee   : > { %vm4217_vm12 = vcmp.eq.s32.totalorder %v2828_v0, %v3582_v27  ;;  %v2135_v59 = vsel %vm1310_vm9, 1.0, %v2500_v60  ;;  %v2138_v18 = vsel %vm1313_vm8, 1.0, %v2500_v60  ;;  %v1660_v27 = vld [vmem:[%s3614_s22] sm:$0x1] }
 0x2ef   : > { %v1566_v36 = vmul.f32 %v1533_v44, %v1533_v44  ;;  %v1681_v32 = vadd.f32 %v2128_v48, %v1680_v8  ;;  %v2131_v3 = vsel %vm4217_vm12, 1.0, %v2500_v60 }
 0x2f1   : > { %v1607_v63 = vsel %vm394_vm0, %v1566_v36, 0.0  ;;  %v1682_v56 = vadd.f32 %v2129_v26, %v1681_v32 }
 0x2f2   : > { %v1608_v39 = vadd.f32 %v1607_v63, %v1606_v13 }
 0x2f3   : > { %v1683_v53 = vadd.f32 %v2130_v23, %v1682_v56 }
 0x2f4   : > { %v1428_v45 = vpop.f32.mrf.mxu1 }
 0x2f5   : > { %1502 = vst.msk [vmem:[%s3497_s21 + $0x58] sm:$0xff] %vm394_vm0, %v1428_v45  ;;  %v1534_v57 = vsub.f32 %v1428_v45, %v2338_v5  ;;  %v1684_v30 = vadd.f32 %v2131_v3, %v1683_v53  ;;  %v1219_v5 = vshll.u32 %v1218_v22, 16 }
 0x2f7   : > { %v1567_v42 = vmul.f32 %v1534_v57, %v1534_v57  ;;  %v1685_v6 = vadd.f32 %v2132_v37, %v1684_v30 }
 0x2f9   : > { %v1609_v25 = vsel %vm394_vm0, %v1567_v42, 0.0  ;;  %v1686_v44 = vadd.f32 %v2133_v2, %v1685_v6 }
 0x2fa   : > { %v1610_v19 = vadd.f32 %v1609_v25, %v1608_v39  ;;  %v2134_v39 = vsel %vm1309_vm5, 1.0, %v2500_v60 }
 0x2fb   : > { %v1687_v57 = vadd.f32 %v2134_v39, %v1686_v44 }
 0x2fd   : > { %v1688_v28 = vadd.f32 %v2135_v59, %v1687_v57 }
 0x309   : > { %v1230_v16 = vpop.xlane.xlu1 %1229 }
 0x30a   : > { %v1231_v1 = vcvt.f32.s32 %v1230_v16 }
 0x30c   : > { %v1234_v62 = vadd.s32 %v1233_v20, %v1231_v1 }
 0x30e   : > { %1280 = vst.msk [vmem:[%s3207_s17 + $0xf0] sm:$0xff] %vm1249_vm3, %v1234_v62  ;;  %vm1312_vm14 = vcmp.eq.s32.totalorder %v2828_v0, %v1234_v62 }
 0x30f   : > { %2188 = vmatpush.msk.msra.mxu3 %vm1312_vm14, %v2499_v4  ;;  %v2137_v14 = vsel %vm1312_vm14, 1.0, %v2500_v60 }
 0x31a   : > { %v1431_v46 = vpop.f32.mrf.mxu1 }
 0x31b   : > { %1503 = vst.msk [vmem:[%s3497_s21 + $0x60] sm:$0xff] %vm394_vm0, %v1431_v46  ;;  %v1535_v35 = vsub.f32 %v1431_v46, %v2339_v15 }
 0x31d   : > { %v1568_v13 = vmul.f32 %v1535_v35, %v1535_v35 }
 0x31f   : > { %v1611_v36 = vsel %vm394_vm0, %v1568_v13, 0.0 }
 0x320   : > { %v1612_v63 = vadd.f32 %v1611_v36, %v1610_v19 }
 0x322   : > { %v1216_v45 = vpop.xlane.xlu2 %1215 }
 0x323   : > { %v1217_v38 = vcvt.f32.s32 %v1216_v45 }
 0x325   : > { %v1220_v42 = vadd.s32 %v1219_v5, %v1217_v38 }
 0x327   : > { %1279 = vst.msk [vmem:[%s3207_s17 + $0xe8] sm:$0xff] %vm1249_vm3, %v1220_v42  ;;  %vm1311_vm1 = vcmp.eq.s32.totalorder %v2828_v0, %v1220_v42  ;;  %vm4219_vm3 = vmmov %vm4218_vm15  ;;  %s1860_s17 = sshll.u32 %s1856_s15, 4  ;;  %s1861_s17 = int_to_ptr.hbm [resolvable:$true] %s1860_s17 }
 0x328   : > { %v2136_v34 = vsel %vm1311_vm1, 1.0, %v2500_v60  ;;  %2168 = vmatmul.msk.f32.gmra.mxu2 %vm1311_vm1, %v2499_v4  ;;  %2189 = vmatpush.msk.msra.mxu3 %vm1311_vm1, %v2499_v4  ;;  %v3920_v25 = vpop.f32.mrf.mxu2  ;;  %s2373_s19 = sshra.s32 %s1861_s17, 4  ;;  %s2374_s19 = int_to_ptr.hbm [resolvable:$true] %s2373_s19 }
 0x329   : > { %v1689_v19 = vadd.f32 %v2136_v34, %v1688_v28  ;;  %1514 = vst.msk [vmem:[%s3497_s21 + $0xb8] sm:$0xff] %vm394_vm0, %v3920_v25  ;;  %s2375_s8 = scalar_lea.hbm %s2374_s19, 1  ;;  %p2380_p1 = scmp.lt.s32.totalorder %s2374_s19, %s4178_s5 }
 0x32a   : > { %2190 = vmatpush.msk.msra.mxu3 %vm1310_vm9, %v2499_v4  ;;  %vm4222_vm9 = vmmov %vm4215_vm6  ;;  %vm4226_vm6 = vcmp.eq.s32.totalorder %v2828_v0, %v3310_v17  ;;  %v2341_v17 = vld [vmem:[%s2617_s23 + $0x70] sm:$0xff]  ;;  %p2376_p12 = scmp.ne.s32.totalorder %s2374_s19, %s2375_s8  ;;  %p2381_p2 = scmp.lt.s32.totalorder %s2379_s10, %s2375_s8 }
 0x32b   : > { %v1690_v58 = vadd.f32 %v2137_v14, %v1689_v19 }
 0x32c   : > { %2191 = vmatpush.msk.msra.mxu3 %vm1309_vm5, %v2499_v4  ;;  %vm4220_vm5 = vmmov %vm4217_vm12  ;;  %p2377_p13 = pnand %p2376_p12, %p2587_p4  ;;  %p2382_p3 = por %p2381_p2, %p2380_p1 }
 0x32d   : > { %v1691_v33 = vadd.f32 %v2138_v18, %v1690_v58 }
 0x32e   : > { %2192 = vmatpush.msk.msra.mxu3 %vm1308_vm4, %v2499_v4  ;;  %vm4221_vm4 = vmmov %vm4216_vm10  ;;  %p2378_p0 = pneg %p2377_p13 }
 0x32f   : > { %v1692_v49 = vrot.slane %v1691_v33, 4 }
 0x330   : > { %2169 = vmatmul.msk.f32.gmra.mxu2 %vm1312_vm14, %v2499_v4  ;;  %2193 = vmatpush.msk.msra.mxu3 %vm4219_vm3, %v2499_v4  ;;  %p2383_p5 = pnand %p2382_p3, %p2378_p0 }
 0x331   : > { %v1693_v51 = vadd.f32 %v1692_v49, %v1691_v33 }
 0x332   : > { %2194 = vmatpush.msk.msra.mxu3 %vm4220_vm5, %v2499_v4 }
 0x333   : > { %v1694_v31 = vrot.slane %v1693_v51, 2 }
 0x334   : > { %2195 = vmatpush.msk.msra.mxu3 %vm4221_vm4, %v2499_v4 }
 0x335   : > { %v1695_v21 = vadd.f32 %v1694_v31, %v1693_v51 }
 0x336   : > { %2196 = vmatpush.msk.msra.mxu3 %vm4222_vm9, %v2499_v4 }
 0x337   : > { %v1696_v55 = vrot.slane %v1695_v21, 1 }
 0x338   : > { %2170 = vmatmul.msk.f32.gmra.mxu2 %vm1313_vm8, %v2499_v4  ;;  %2197 = vmatpush.msk.msra.mxu3 %vm4223_vm13, %v2499_v4  ;;  %v3971_v52 = vpop.f32.mrf.mxu2  ;;  %vm4225_vm8 = vcmp.eq.s32.totalorder %v2828_v0, %v3279_v41 }
 0x339   : > { %1515 = vst.msk [vmem:[%s3497_s21 + $0xc0] sm:$0xff] %vm394_vm0, %v3971_v52  ;;  %v1697_v43 = vadd.f32 %v1696_v55, %v1695_v21 }
 0x33a   : > { %2198 = vmatpush.msk.msra.mxu3 %vm4224_vm7, %v2499_v4 }
 0x33b   : > { %v1434_v24 = vpop.f32.mrf.mxu1  ;;  %v1698_v50 = vadd.f32 %v1697_v43, %v1660_v27 }
 0x33c   : > { %1504 = vst.msk [vmem:[%s3497_s21 + $0x68] sm:$0xff] %vm394_vm0, %v1434_v24  ;;  %v1536_v61 = vsub.f32 %v1434_v24, %v2340_v9  ;;  %2199 = vmatpush.msk.msra.mxu3 %vm4225_vm8, %v2499_v4 }
 0x33d   : > { %1699 = vst [vmem:[%s3614_s22] sm:$0x1] %v1698_v50 }
 0x33e   : > { %v1569_v8 = vmul.f32 %v1536_v61, %v1536_v61  ;;  %2200 = vmatpush.msk.msra.mxu3 %vm4226_vm6, %v2499_v4 }
 0x340   : > { %v1613_v11 = vsel %vm394_vm0, %v1569_v8, 0.0  ;;  %2201 = vmatpush.msk.msra.mxu3 %vm1299_vm2, %v2499_v4  ;;  %2233 = vmatmul.lmr.bf16.vlgmr.msra.gmra.2.mxu2 }
 0x341   : > { %v1614_v16 = vadd.f32 %v1613_v11, %v1612_v63 }
 0x342   : > { %2202 = vmatpush.msk.msra.mxu3 %vm1298_vm11, %v2499_v4  ;;  %v2342_v4 = vld [vmem:[%s2617_s23 + $0x78] sm:$0xff] }
 0x343   : > { %v1437_v41 = vpop.f32.mrf.mxu1  ;;  %2255 = vmatmul.lmr.bf16.vlgmr.msra.gmra.2.mxu3 }
 0x344   : > { %1505 = vst.msk [vmem:[%s3497_s21 + $0x70] sm:$0xff] %vm394_vm0, %v1437_v41  ;;  %v1537_v48 = vsub.f32 %v1437_v41, %v2341_v17 }
 0x346   : > { %v1570_v20 = vmul.f32 %v1537_v48, %v1537_v48 }
 0x348   : > { %v1615_v40 = vsel %vm394_vm0, %v1570_v20, 0.0  ;;  %2234 = vmatmul.lmr.bf16.gmra.2.mxu2 }
 0x349   : > { %v1616_v1 = vadd.f32 %v1615_v40, %v1614_v16  ;;  %v4006_v32 = vpop.f32.mrf.mxu2 }
 0x34a   : > { %1516 = vst.msk [vmem:[%s3497_s21 + $0xc8] sm:$0xff] %vm394_vm0, %v4006_v32 }
 0x34b   : > { %v1440_v0 = vpop.f32.mrf.mxu1  ;;  %2256 = vmatmul.lmr.bf16.gmra.2.mxu3 }
 0x34c   : > { %1506 = vst.msk [vmem:[%s3497_s21 + $0x78] sm:$0xff] %vm394_vm0, %v1440_v0  ;;  %v1538_v10 = vsub.f32 %v1440_v0, %v2342_v4 }
 0x34e   : > { %v1571_v62 = vmul.f32 %v1538_v10, %v1538_v10 }
 0x350   : > { %v1617_v26 = vsel %vm394_vm0, %v1571_v62, 0.0 }
 0x351   : > { %v1618_v56 = vadd.f32 %v1617_v26, %v1616_v1 }
 0x358   : > { %v4015_v23 = vpop.f32.mrf.mxu2 }
 0x359   : > { %1517 = vst.msk [vmem:[%s3497_s21 + $0xd0] sm:$0xff] %vm394_vm0, %v4015_v23 }
 0x35b   : > { %v1443_v53 = vpop.f32.mrf.mxu1 }
 0x35c   : > { %2386 = shalt.err (!%p2383_p5)
}
 0x35d   : > { %2257 = dma.vmem_to_hbm [thread:$0]  (%p2587_p4), %s1859_s16, 16, %s1861_s17, %s1829_s18   ;;  %1507 = vst.msk [vmem:[%s3497_s21 + $0x80] sm:$0xff] %vm394_vm0, %v1443_v53  ;;  %v2343_v3 = vld [vmem:[%s2617_s23 + $0x80] sm:$0xff]  ;;  %v2344_v35 = vld [vmem:[%s2617_s23 + $0x90] sm:$0xff]  ;;  %v2345_v22 = vld [vmem:[%s2617_s23 + $0x98] sm:$0xff]  ;;  %vm357_vm11 = vcmask 122880  }
 0x35e   : > { %v1539_v30 = vsub.f32 %v1443_v53, %v2343_v3  ;;  %v1541_v13 = vsub.f32 %v3645_v54, %v2344_v35  ;;  %v1542_v44 = vsub.f32 %v3667_v12, %v2345_v22  ;;  %v2346_v36 = vld [vmem:[%s2617_s23 + $0x88] sm:$0xff]  ;;  %v2347_v45 = vld [vmem:[%s2617_s23 + $0xa0] sm:$0xff]  ;;  %v2349_v14 = vld [vmem:[%s2617_s23 + $0xb0] sm:$0xff]  ;;  %s4078_s0 = scalar_lea.vmem [#allocation6], %s3585_s20  ;;  %s2068_s30 = sshll.u32 %s3585_s20, 4 }
 0x35f   : > { %v1543_v5 = vsub.f32 %v3696_v29, %v2347_v45  ;;  %v2348_v42 = vld [vmem:[%s2617_s23 + $0xa8] sm:$0xff]  ;;  %v1545_v58 = vsub.f32 %v3819_v7, %v2349_v14  ;;  %v2351_v55 = vld [vmem:[%s2617_s23 + $0xc0] sm:$0xff]  ;;  %358 = vst.msk [vmem:[%s4078_s0] sm:$0x1] %vm357_vm11, %v2500_v60  ;;  %v2357_v35 = vld [vmem:[%s2617_s23 + $0xf0] sm:$0xff]  ;;  %s2208_s8 = sshll.u32 %s2489_s27, 4  ;;  %s1886_s10 = scalar_lea.hbm %s4180_s7, %s2489_s27 }
 0x360   : > { %v1572_v37 = vmul.f32 %v1539_v30, %v1539_v30  ;;  %v1476_v6 = vpop.f32.mrf.mxu2  ;;  %v1574_v39 = vmul.f32 %v1541_v13, %v1541_v13  ;;  %v1575_v38 = vmul.f32 %v1542_v44, %v1542_v44  ;;  %v1544_v54 = vsub.f32 %v3736_v47, %v2348_v42  ;;  %v2350_v47 = vld [vmem:[%s2617_s23 + $0xb8] sm:$0xff]  ;;  %v2352_v50 = vld [vmem:[%s2617_s23 + $0xc8] sm:$0xff]  ;;  %v2355_v30 = vld [vmem:[%s2617_s23 + $0xe0] sm:$0xff]  ;;  %s1871_s15 = scalar_lea.hbm %s4179_s6, %s2208_s8  ;;  %s319_s16 = scalar_lea.vmem [#allocation4], %s2068_s30 }
 0x361   : > { %1518 = vst.msk [vmem:[%s3497_s21 + $0xd8] sm:$0xff] %vm394_vm0, %v1476_v6  ;;  %v1576_v19 = vmul.f32 %v1543_v5, %v1543_v5  ;;  %v1546_v49 = vsub.f32 %v3920_v25, %v2350_v47  ;;  %v1578_v21 = vmul.f32 %v1545_v58, %v1545_v58  ;;  %v1547_v27 = vsub.f32 %v3971_v52, %v2351_v55  ;;  %v2353_v25 = vld [vmem:[%s2617_s23 + $0xd0] sm:$0xff]  ;;  %v2354_v52 = vld [vmem:[%s2617_s23 + $0xd8] sm:$0xff]  ;;  %s4227_s17 = sadd.s32 4294967295, %s2497_s29   ;;  %s1872_s22 = sshll.u32 %s319_s16, 4  ;;  %s1873_s22 = int_to_ptr.vmem [resolvable:$true] %s1872_s22 }
 0x362   : > { %v1619_v46 = vsel %vm394_vm0, %v1572_v37, 0.0  ;;  %v1623_v34 = vsel %vm394_vm0, %v1574_v39, 0.0  ;;  %v1625_v18 = vsel %vm394_vm0, %v1575_v38, 0.0  ;;  %v1577_v33 = vmul.f32 %v1544_v54, %v1544_v54  ;;  %v2358_v5 = vld [vmem:[%s2617_s23 + $0xf8] sm:$0xff]  ;;  %s4104_s18 = sand.u32 1, %s4227_s17   ;;  %s1874_s12 = sshll.u32 %s1871_s15, 4  ;;  %s1875_s12 = int_to_ptr.hbm [resolvable:$true] %s1874_s12 }
 0x363   : > { %v1620_v15 = vadd.f32 %v1619_v46, %v1618_v56  ;;  %v1446_v2 = vpop.f32.mrf.mxu1  ;;  %v1627_v31 = vsel %vm394_vm0, %v1576_v19, 0.0  ;;  %v1579_v24 = vmul.f32 %v1546_v49, %v1546_v49  ;;  %v1548_v9 = vsub.f32 %v4006_v32, %v2352_v50  ;;  %v2356_v46 = vld [vmem:[%s2617_s23 + $0xe8] sm:$0xff]  ;;  %s1888_s30 = sshll.u32 %s4078_s0, 4  ;;  %s4112_s8 = sshll.u32 %s1886_s10, 4  ;;  %s4116_s30 = int_to_ptr.vmem [resolvable:$true] %s1888_s30  ;;  %s1891_s8 = int_to_ptr.hbm [resolvable:$true] %s4112_s8 }
 0x364   : > { %1508 = vst.msk [vmem:[%s3497_s21 + $0x88] sm:$0xff] %vm394_vm0, %v1446_v2  ;;  %v1540_v63 = vsub.f32 %v1446_v2, %v2346_v36  ;;  %v1629_v7 = vsel %vm394_vm0, %v1577_v33, 0.0  ;;  %v1631_v8 = vsel %vm394_vm0, %v1578_v21, 0.0  ;;  %v1580_v11 = vmul.f32 %v1547_v27, %v1547_v27  ;;  %s1833_s27 = scalar_lea.sflag [#allocation5], %s4104_s18  ;;  %s2401_s23 = sshra.s32 %s1875_s12, 4  ;;  %s2402_s23 = int_to_ptr.hbm [resolvable:$true] %s2401_s23 }
 0x365   : > { %v1549_v16 = vsub.f32 %v4015_v23, %v2353_v25  ;;  %v1633_v17 = vsel %vm394_vm0, %v1579_v24, 0.0  ;;  %v1581_v48 = vmul.f32 %v1548_v9, %v1548_v9  ;;  %v1550_v20 = vsub.f32 %v1476_v6, %v2354_v52  ;;  %s2407_s20 = scalar_lea.hbm %s4179_s6, 32  ;;  %p2408_p10 = scmp.lt.s32.totalorder %s2402_s23, %s4179_s6 }
 0x366   : > { %v1573_v57 = vmul.f32 %v1540_v63, %v1540_v63  ;;  %v1635_v1 = vsel %vm394_vm0, %v1580_v11, 0.0  ;;  %v1555_v49 = vld [vmem:[%s4078_s0] sm:$0x1] }
 0x367   : > { %v1582_v32 = vmul.f32 %v1549_v16, %v1549_v16  ;;  %v1637_v4 = vsel %vm394_vm0, %v1581_v48, 0.0  ;;  %v1583_v10 = vmul.f32 %v1550_v20, %v1550_v20 }
 0x368   : > { %v1621_v59 = vsel %vm394_vm0, %v1573_v57, 0.0 }
 0x369   : > { %v1622_v12 = vadd.f32 %v1621_v59, %v1620_v15  ;;  %v1479_v28 = vpop.f32.mrf.mxu2  ;;  %v1639_v26 = vsel %vm394_vm0, %v1582_v32, 0.0  ;;  %v1641_v23 = vsel %vm394_vm0, %v1583_v10, 0.0 }
 0x36a   : > { %1519 = vst.msk [vmem:[%s3497_s21 + $0xe0] sm:$0xff] %vm394_vm0, %v1479_v28  ;;  %v1551_v37 = vsub.f32 %v1479_v28, %v2355_v30 }
 0x36b   : > { %v1624_v29 = vadd.f32 %v1623_v34, %v1622_v12 }
 0x36c   : > { %v1584_v2 = vmul.f32 %v1551_v37, %v1551_v37 }
 0x36d   : > { %v1626_v51 = vadd.f32 %v1625_v18, %v1624_v29 }
 0x36e   : > { %v1643_v36 = vsel %vm394_vm0, %v1584_v2, 0.0 }
 0x36f   : > { %v1628_v43 = vadd.f32 %v1627_v31, %v1626_v51 }
 0x371   : > { %v1630_v61 = vadd.f32 %v1629_v7, %v1628_v43 }
 0x373   : > { %v1632_v41 = vadd.f32 %v1631_v8, %v1630_v61 }
 0x375   : > { %v1634_v40 = vadd.f32 %v1633_v17, %v1632_v41 }
 0x377   : > { %v1636_v0 = vadd.f32 %v1635_v1, %v1634_v40 }
 0x379   : > { %v1638_v62 = vadd.f32 %v1637_v4, %v1636_v0 }
 0x37b   : > { %v1640_v56 = vadd.f32 %v1639_v26, %v1638_v62 }
 0x37d   : > { %v1642_v53 = vadd.f32 %v1641_v23, %v1640_v56 }
 0x37f   : > { %v1644_v63 = vadd.f32 %v1643_v36, %v1642_v53 }
 0x3ab   : > { %v1482_v3 = vpop.f32.mrf.mxu2 }
 0x3ac   : > { %1520 = vst.msk [vmem:[%s3497_s21 + $0xe8] sm:$0xff] %vm394_vm0, %v1482_v3  ;;  %v1552_v6 = vsub.f32 %v1482_v3, %v2356_v46 }
 0x3ae   : > { %v1585_v22 = vmul.f32 %v1552_v6, %v1552_v6 }
 0x3b0   : > { %v1645_v60 = vsel %vm394_vm0, %v1585_v22, 0.0 }
 0x3b1   : > { %v1646_v38 = vadd.f32 %v1645_v60, %v1644_v63 }
 0x3b3   : > { %v1485_v15 = vpop.f32.mrf.mxu2 }
 0x3b4   : > { %1521 = vst.msk [vmem:[%s3497_s21 + $0xf0] sm:$0xff] %vm394_vm0, %v1485_v15  ;;  %v1553_v13 = vsub.f32 %v1485_v15, %v2357_v35 }
 0x3b6   : > { %v1586_v44 = vmul.f32 %v1553_v13, %v1553_v13 }
 0x3b8   : > { %v1647_v45 = vsel %vm394_vm0, %v1586_v44, 0.0 }
 0x3b9   : > { %v1648_v54 = vadd.f32 %v1647_v45, %v1646_v38 }
 0x3bb   : > { %v1488_v39 = vpop.f32.mrf.mxu2 }
 0x3bc   : > { %1522 = vst.msk [vmem:[%s3497_s21 + $0xf8] sm:$0xff] %vm394_vm0, %v1488_v39  ;;  %v1554_v57 = vsub.f32 %v1488_v39, %v2358_v5  ;;  %s2403_s21 = scalar_lea.hbm %s2402_s23, 16 }
 0x3bd   : > { %p2404_p6 = scmp.ne.s32.totalorder %s2402_s23, %s2403_s21  ;;  %p2409_p11 = scmp.lt.s32.totalorder %s2407_s20, %s2403_s21 }
 0x3be   : > { %v1587_v42 = vmul.f32 %v1554_v57, %v1554_v57 }
 0x3bf   : > { %p2405_p7 = pnand %p2404_p6, %p2587_p4  ;;  %p2410_p12 = por %p2409_p11, %p2408_p10 }
 0x3c0   : > { %v1649_v59 = vsel %vm394_vm0, %v1587_v42, 0.0 }
 0x3c1   : > { %v1650_v12 = vadd.f32 %v1649_v59, %v1648_v54  ;;  %p2406_p9 = pneg %p2405_p7 }
 0x3c3   : > { %v1651_v28 = vrot.slane %v1650_v12, 4  ;;  %v1783_v34 = vpop.f32.mrf.mxu2  ;;  %p2411_p13 = pnand %p2410_p12, %p2406_p9 }
 0x3c5   : > { %v1652_v19 = vadd.f32 %v1651_v28, %v1650_v12 }
 0x3c6   : > { %v1806_v14 = vpop.f32.mrf.mxu3 }
 0x3c7   : > { %v1653_v58 = vrot.slane %v1652_v19, 2  ;;  %v1807_v29 = vadd.f32 %v1806_v14, %v1783_v34 }
 0x3c9   : > { %v1654_v18 = vadd.f32 %v1653_v58, %v1652_v19  ;;  %1814 = vst [vmem:[%s319_s16] sm:$0xff] %v1807_v29 }
 0x3cb   : > { %v1655_v33 = vrot.slane %v1654_v18, 1  ;;  %v1786_v47 = vpop.f32.mrf.mxu2 }
 0x3cd   : > { %v1656_v51 = vadd.f32 %v1655_v33, %v1654_v18 }
 0x3ce   : > { %v1809_v31 = vpop.f32.mrf.mxu3 }
 0x3cf   : > { %v1810_v21 = vadd.f32 %v1809_v31, %v1786_v47  ;;  %v1657_v55 = vadd.f32 %v1656_v51, %v1555_v49 }
 0x3d1   : > { %1659 = vst.msk [vmem:[%s4078_s0] sm:$0x1] %vm357_vm11, %v1657_v55 }
 0x3d2   : > { %1815 = vst [vmem:[%s319_s16 + $0x8] sm:$0xff] %v1810_v21 }
 0x3d3   : > { %2414 = shalt.err (!%p2411_p13)
}
 0x3d4   : > { %s2501_s0 = smov 128   ;;  %s2502_s16 = smov 8  }
 0x3d5   : > { %2258 = dma.vmem_to_hbm [thread:$0]  (%p2587_p4), %s1873_s22, 256, %s1875_s12, %s1833_s27, %s2501_s0, %s2501_s0, %s2502_s16  }
 0x3d6   : > { %s2429_s15 = sshra.s32 %s1891_s8, 4  ;;  %s2435_s20 = scalar_lea.hbm %s4180_s7, 2  ;;  %s2430_s15 = int_to_ptr.hbm [resolvable:$true] %s2429_s15 }
 0x3d7   : > { %s2431_s17 = scalar_lea.hbm %s2430_s15, 1  ;;  %p2436_p3 = scmp.lt.s32.totalorder %s2430_s15, %s4180_s7 }
 0x3d8   : > { %p2432_p0 = scmp.ne.s32.totalorder %s2430_s15, %s2431_s17  ;;  %p2437_p5 = scmp.lt.s32.totalorder %s2435_s20, %s2431_s17 }
 0x3da   : > { %p2433_p1 = pnand %p2432_p0, %p2587_p4  ;;  %p2438_p6 = por %p2437_p5, %p2436_p3 }
 0x3dc   : > { %p2434_p2 = pneg %p2433_p1 }
 0x3de   : > { %p2439_p7 = pnand %p2438_p6, %p2434_p2 }
 0x3e0   : > { %2442 = shalt.err (!%p2439_p7)
}
 0x3e1   : > { %2259 = dma.vmem_to_hbm [thread:$0]  (%p2587_p4), %s4116_s30, 16, %s1891_s8, %s1833_s27  }
 0x3e2 PF: > { %p2273_p9 = scmp.ge.s32.totalorder %s2497_s29, 2  ;;  %s1920_s22 = sand.u32 1, %s2477_s24  }
 0x3e3   : > { %s1921_s12 = scalar_lea.sflag [#allocation3], %s1920_s22 }
 0x3e4   : > { %p2264_p10 = pnand %p2273_p9, %p2596_p8 }
 0x3e6   : > { %p2265_p11 = pneg %p2264_p10 }
 0x3e8   : > { %2468 = dma.done.wait (%p2265_p11), %s1921_s12, 16  }
 0x3e9   : > { %2470 = vsyncadd (%p2265_p11), %s1921_s12, 4294967280  ;;  %s4228_s11 = sadd.s32 4294967294, %s2497_s29  }
 0x3ea   : > { %s1929_s0 = sand.u32 1, %s4228_s11  }
 0x3eb   : > { %s1930_s18 = scalar_lea.sflag [#allocation5], %s1929_s0 }
 0x3ec   : > { %2472 = dma.done.wait (%p2265_p11), %s1930_s18, 272  }
 0x3ed   : > { %2474 = vsyncadd (%p2265_p11), %s1930_s18, 4294967024  ;;  %s24_s29 = sadd.s32 1, %s2497_s29   ;;  %s4229_s24 = smov %s2481_s25 }
 0x3ee   : > { %p21_p4 = scmp.ge.s32.totalorder %s24_s29, 4   ;;  %s4230_s25 = smov %s2485_s26 }
 0x3ef   : > { %s4231_s26 = smov %s2602_s14  ;;  %s4232_s27 = smov %s2493_s28 }
 0x3f0   : > { %s4233_s28 = smov %s4235_s9  ;;  %23 = sbr.rel (!%p21_p4) target bundleno = 8 (0x8), region = 127 }
 0x3f5   :  { %1945 = vsyncpa [#allocation3], 1 }
 0x3f6   :  { %1947 = vsyncpa [#allocation3 + $0x1], 1 }
 0x3f7   :  { %1948 = vsyncpa [#allocation5], 1 }
 0x3f8   :  { %1950 = vsyncpa [#allocation5 + $0x1], 1 }

</bundles_post_ra>
